<compile_context>
chip_gen: v6e
topology: v6e:2x2x1
jax: 0.10.0
libtpu: 0.0.40
codegen_flags: <defaults>
</compile_context>

<pallas_src>
import functools

import jax
import jax.numpy as jnp
from jax.experimental import pallas as pl
from jax.experimental.pallas import tpu as pltpu


# -----------------------------------------------------------------------------
# Fused kernel: all LSTM layers + final Linear in one invocation.
# -----------------------------------------------------------------------------
def _fused_lstm_kernel(*refs, hidden_size, seq_len, num_layers):
    # refs = (x, [w_ih, w_hh, b] * num_layers, lin_w, lin_b, out)
    x_ref = refs[0]
    layer_refs = [refs[1 + 3 * l: 1 + 3 * (l + 1)] for l in range(num_layers)]
    lin_w_ref = refs[1 + 3 * num_layers]
    lin_b_ref = refs[2 + 3 * num_layers]
    o_ref = refs[3 + 3 * num_layers]

    H = hidden_size
    B = x_ref.shape[1]

    # Hoist all weight loads out of the time loop (they stay vreg/VMEM resident).
    weights = [(w_ih[...], w_hh[...], b[...]) for (w_ih, w_hh, b) in layer_refs]

    zeros = jnp.zeros((B, H), jnp.float32)
    hs = [zeros] * num_layers          # register-carried hidden states
    cs = [zeros] * num_layers          # register-carried cell states

    def cell(x_t, h, c, w_ih, w_hh, b):
        gates = (
            jnp.dot(x_t, w_ih, preferred_element_type=jnp.float32)
            + jnp.dot(h, w_hh, preferred_element_type=jnp.float32)
            + b
        )                               # (B, 4H), PyTorch gate order i,f,g,o
        i_g = jax.nn.sigmoid(gates[:, 0 * H:1 * H])
        f_g = jax.nn.sigmoid(gates[:, 1 * H:2 * H])
        g_g = jnp.tanh(gates[:, 2 * H:3 * H])
        o_g = jax.nn.sigmoid(gates[:, 3 * H:4 * H])
        c_new = f_g * c + i_g * g_g
        h_new = o_g * jnp.tanh(c_new)
        return h_new, c_new

    # Fully unrolled static time loop (seq_len is a Python int and small).
    for t in range(seq_len):
        inp = x_ref[t]                  # (B, F) — static index, no DMA
        for l in range(num_layers):
            w_ih, w_hh, b = weights[l]
            hs[l], cs[l] = cell(inp, hs[l], cs[l], w_ih, w_hh, b)
            inp = hs[l]

    # Final Linear on the last layer's last hidden state; single lane store.
    o_ref[...] = (
        jnp.dot(hs[-1], lin_w_ref[...], preferred_element_type=jnp.float32)
        + lin_b_ref[...]
    ).astype(o_ref.dtype)


def time_aware_lstm_forward(x, params, hidden_size):
    """x: (B, T, input_size)  (batch_first, like the PyTorch module)."""
    B, T, _ = x.shape
    x_tm = jnp.transpose(x, (1, 0, 2))              # (T, B, F) time-major
    layers = params["lstm_layers"]
    num_layers = len(layers)
    O = params["lin_w_t"].shape[1]

    flat_args = [x_tm]
    for (w_ih_t, w_hh_t, b) in layers:
        flat_args.extend([w_ih_t, w_hh_t, b])
    flat_args.extend([params["lin_w_t"], params["lin_b"]])

    kernel = functools.partial(
        _fused_lstm_kernel,
        hidden_size=hidden_size, seq_len=T, num_layers=num_layers)

    vmem_spec = pl.BlockSpec(memory_space=pltpu.MemorySpace.VMEM)
    return pl.pallas_call(
        kernel,
        out_shape=jax.ShapeDtypeStruct((B, O), jnp.float32),
        in_specs=[vmem_spec] * len(flat_args),
        out_specs=vmem_spec,
    )(*flat_args)


# -----------------------------------------------------------------------------
# Deterministic parameter init (PyTorch-style uniform(-1/sqrt(H), 1/sqrt(H)))
# -----------------------------------------------------------------------------
def init_params(key, input_size, hidden_size, num_layers, output_size):
    H = hidden_size
    bound = 1.0 / jnp.sqrt(jnp.float32(H))
    params = {"lstm_layers": []}
    for layer in range(num_layers):
        in_f = input_size if layer == 0 else H
        key, k1, k2, k3, k4 = jax.random.split(key, 5)
        w_ih = jax.random.uniform(k1, (4 * H, in_f), jnp.float32, -bound, bound)
        w_hh = jax.random.uniform(k2, (4 * H, H), jnp.float32, -bound, bound)
        b_ih = jax.random.uniform(k3, (4 * H,), jnp.float32, -bound, bound)
        b_hh = jax.random.uniform(k4, (4 * H,), jnp.float32, -bound, bound)
        params["lstm_layers"].append(
            (w_ih.T, w_hh.T, (b_ih + b_hh).reshape(1, 4 * H)))
    key, k1, k2 = jax.random.split(key, 3)
    lin_w = jax.random.uniform(k1, (output_size, H), jnp.float32, -bound, bound)
    lin_b = jax.random.uniform(k2, (output_size,), jnp.float32, -bound, bound)
    params["lin_w_t"] = lin_w.T                     # (H, O)
    params["lin_b"] = lin_b.reshape(1, output_size)  # (1, O)
    return params


# -----------------------------------------------------------------------------
# Pure-JAX reference (for correctness check)
# -----------------------------------------------------------------------------
def reference_forward(x, params, hidden_size):
    H = hidden_size
    h_seq = jnp.transpose(x, (1, 0, 2))
    for (w_ih_t, w_hh_t, b) in params["lstm_layers"]:
        B = h_seq.shape[1]

        def step(carry, x_t):
            h, c = carry
            gates = x_t @ w_ih_t + h @ w_hh_t + b
            i = jax.nn.sigmoid(gates[:, 0 * H:1 * H])
            f = jax.nn.sigmoid(gates[:, 1 * H:2 * H])
            g = jnp.tanh(gates[:, 2 * H:3 * H])
            o = jax.nn.sigmoid(gates[:, 3 * H:4 * H])
            c = f * c + i * g
            h = o * jnp.tanh(c)
            return (h, c), h

        init = (jnp.zeros((B, H), jnp.float32), jnp.zeros((B, H), jnp.float32))
        _, h_seq = jax.lax.scan(step, init, h_seq)
    return h_seq[-1] @ params["lin_w_t"] + params["lin_b"]


if __name__ == "__main__":
    INPUT_SIZE, HIDDEN_SIZE, NUM_LAYERS, OUTPUT_SIZE = 6, 32, 2, 1
    BATCH, SEQ = 2, 8

    key = jax.random.PRNGKey(0)
    kp, kx = jax.random.split(key)
    params = init_params(kp, INPUT_SIZE, HIDDEN_SIZE, NUM_LAYERS, OUTPUT_SIZE)
    x = jax.random.normal(kx, (BATCH, SEQ, INPUT_SIZE), jnp.float32)

    out = time_aware_lstm_forward(x, params, HIDDEN_SIZE)
    out = jax.block_until_ready(out)

    ref = jax.block_until_ready(reference_forward(x, params, HIDDEN_SIZE))
    assert out.shape == (BATCH, OUTPUT_SIZE), out.shape
    assert jnp.allclose(out, ref, atol=1e-5, rtol=1e-5), (out, ref)

    print("KERNEL_OK")
</pallas_src>

<mosaic_0001>
module attributes {stable_mosaic.version = 11 : i64} {
  func.func @_fused_lstm_kernel(%arg0: memref<8x2x6xf32, #tpu.memory_space<vmem>>, %arg1: memref<6x128xf32, #tpu.memory_space<vmem>>, %arg2: memref<32x128xf32, #tpu.memory_space<vmem>>, %arg3: memref<1x128xf32, #tpu.memory_space<vmem>>, %arg4: memref<32x128xf32, #tpu.memory_space<vmem>>, %arg5: memref<32x128xf32, #tpu.memory_space<vmem>>, %arg6: memref<1x128xf32, #tpu.memory_space<vmem>>, %arg7: memref<32x1xf32, #tpu.memory_space<vmem>>, %arg8: memref<1x1xf32, #tpu.memory_space<vmem>>, %arg9: memref<2x1xf32, #tpu.memory_space<vmem>>) attributes {dimension_semantics = [], scalar_prefetch = 0 : i64, scratch_operands = 0 : i64, tpu.core_type = #tpu.core_type<tc>} {
    %c0 = arith.constant 0 : index
    %c0_0 = arith.constant 0 : index
    %0 = vector.load %arg1[%c0, %c0_0] : memref<6x128xf32, #tpu.memory_space<vmem>>, vector<6x128xf32>
    %c0_1 = arith.constant 0 : index
    %c0_2 = arith.constant 0 : index
    %1 = vector.load %arg2[%c0_1, %c0_2] : memref<32x128xf32, #tpu.memory_space<vmem>>, vector<32x128xf32>
    %c0_3 = arith.constant 0 : index
    %c0_4 = arith.constant 0 : index
    %2 = vector.load %arg3[%c0_3, %c0_4] : memref<1x128xf32, #tpu.memory_space<vmem>>, vector<1x128xf32>
    %c0_5 = arith.constant 0 : index
    %c0_6 = arith.constant 0 : index
    %3 = vector.load %arg4[%c0_5, %c0_6] : memref<32x128xf32, #tpu.memory_space<vmem>>, vector<32x128xf32>
    %c0_7 = arith.constant 0 : index
    %c0_8 = arith.constant 0 : index
    %4 = vector.load %arg5[%c0_7, %c0_8] : memref<32x128xf32, #tpu.memory_space<vmem>>, vector<32x128xf32>
    %c0_9 = arith.constant 0 : index
    %c0_10 = arith.constant 0 : index
    %5 = vector.load %arg6[%c0_9, %c0_10] : memref<1x128xf32, #tpu.memory_space<vmem>>, vector<1x128xf32>
    %cst = arith.constant 0.000000e+00 : f32
    %6 = vector.broadcast %cst : f32 to vector<2x32xf32>
    %c0_11 = arith.constant 0 : index
    %c0_12 = arith.constant 0 : index
    %c0_13 = arith.constant 0 : index
    %7 = vector.load %arg0[%c0_11, %c0_12, %c0_13] : memref<8x2x6xf32, #tpu.memory_space<vmem>>, vector<1x2x6xf32>
    %8 = vector.shape_cast %7 : vector<1x2x6xf32> to vector<2x6xf32>
    %cst_14 = arith.constant dense<0.000000e+00> : vector<2x128xf32>
    %9 = tpu.matmul %8, %0, %cst_14 {dimension_numbers = #tpu.dot_dimension_numbers<[1], [0], [0], [1], [0, 0, 1, 1], [], []>} : vector<2x6xf32>, vector<6x128xf32>, vector<2x128xf32> -> vector<2x128xf32>
    %cst_15 = arith.constant dense<0.000000e+00> : vector<2x128xf32>
    %10 = tpu.matmul %6, %1, %cst_15 {dimension_numbers = #tpu.dot_dimension_numbers<[1], [0], [0], [1], [0, 0, 1, 1], [], []>} : vector<2x32xf32>, vector<32x128xf32>, vector<2x128xf32> -> vector<2x128xf32>
    %11 = arith.addf %9, %10 : vector<2x128xf32>
    %12 = vector.broadcast %2 : vector<1x128xf32> to vector<2x128xf32>
    %13 = arith.addf %11, %12 : vector<2x128xf32>
    %14 = vector.extract_strided_slice %13 {offsets = [0, 0], sizes = [2, 32], strides = [1, 1]} : vector<2x128xf32> to vector<2x32xf32>
    %15 = arith.negf %14 : vector<2x32xf32>
    %16 = math.exp %15 : vector<2x32xf32>
    %cst_16 = arith.constant 1.000000e+00 : f32
    %17 = vector.broadcast %cst_16 : f32 to vector<2x32xf32>
    %18 = arith.addf %17, %16 : vector<2x32xf32>
    %19 = arith.divf %17, %18 : vector<2x32xf32>
    %20 = vector.extract_strided_slice %13 {offsets = [0, 32], sizes = [2, 32], strides = [1, 1]} : vector<2x128xf32> to vector<2x32xf32>
    %21 = arith.negf %20 : vector<2x32xf32>
    %22 = math.exp %21 : vector<2x32xf32>
    %cst_17 = arith.constant 1.000000e+00 : f32
    %23 = vector.broadcast %cst_17 : f32 to vector<2x32xf32>
    %24 = arith.addf %23, %22 : vector<2x32xf32>
    %25 = arith.divf %23, %24 : vector<2x32xf32>
    %26 = vector.extract_strided_slice %13 {offsets = [0, 64], sizes = [2, 32], strides = [1, 1]} : vector<2x128xf32> to vector<2x32xf32>
    %27 = math.tanh %26 : vector<2x32xf32>
    %28 = vector.extract_strided_slice %13 {offsets = [0, 96], sizes = [2, 32], strides = [1, 1]} : vector<2x128xf32> to vector<2x32xf32>
    %29 = arith.negf %28 : vector<2x32xf32>
    %30 = math.exp %29 : vector<2x32xf32>
    %cst_18 = arith.constant 1.000000e+00 : f32
    %31 = vector.broadcast %cst_18 : f32 to vector<2x32xf32>
    %32 = arith.addf %31, %30 : vector<2x32xf32>
    %33 = arith.divf %31, %32 : vector<2x32xf32>
    %34 = arith.mulf %25, %6 : vector<2x32xf32>
    %35 = arith.mulf %19, %27 : vector<2x32xf32>
    %36 = arith.addf %34, %35 : vector<2x32xf32>
    %37 = math.tanh %36 : vector<2x32xf32>
    %38 = arith.mulf %33, %37 : vector<2x32xf32>
    %cst_19 = arith.constant dense<0.000000e+00> : vector<2x128xf32>
    %39 = tpu.matmul %38, %3, %cst_19 {dimension_numbers = #tpu.dot_dimension_numbers<[1], [0], [0], [1], [0, 0, 1, 1], [], []>} : vector<2x32xf32>, vector<32x128xf32>, vector<2x128xf32> -> vector<2x128xf32>
    %cst_20 = arith.constant dense<0.000000e+00> : vector<2x128xf32>
    %40 = tpu.matmul %6, %4, %cst_20 {dimension_numbers = #tpu.dot_dimension_numbers<[1], [0], [0], [1], [0, 0, 1, 1], [], []>} : vector<2x32xf32>, vector<32x128xf32>, vector<2x128xf32> -> vector<2x128xf32>
    %41 = arith.addf %39, %40 : vector<2x128xf32>
    %42 = vector.broadcast %5 : vector<1x128xf32> to vector<2x128xf32>
    %43 = arith.addf %41, %42 : vector<2x128xf32>
    %44 = vector.extract_strided_slice %43 {offsets = [0, 0], sizes = [2, 32], strides = [1, 1]} : vector<2x128xf32> to vector<2x32xf32>
    %45 = arith.negf %44 : vector<2x32xf32>
    %46 = math.exp %45 : vector<2x32xf32>
    %cst_21 = arith.constant 1.000000e+00 : f32
    %47 = vector.broadcast %cst_21 : f32 to vector<2x32xf32>
    %48 = arith.addf %47, %46 : vector<2x32xf32>
    %49 = arith.divf %47, %48 : vector<2x32xf32>
    %50 = vector.extract_strided_slice %43 {offsets = [0, 32], sizes = [2, 32], strides = [1, 1]} : vector<2x128xf32> to vector<2x32xf32>
    %51 = arith.negf %50 : vector<2x32xf32>
    %52 = math.exp %51 : vector<2x32xf32>
    %cst_22 = arith.constant 1.000000e+00 : f32
    %53 = vector.broadcast %cst_22 : f32 to vector<2x32xf32>
    %54 = arith.addf %53, %52 : vector<2x32xf32>
    %55 = arith.divf %53, %54 : vector<2x32xf32>
    %56 = vector.extract_strided_slice %43 {offsets = [0, 64], sizes = [2, 32], strides = [1, 1]} : vector<2x128xf32> to vector<2x32xf32>
    %57 = math.tanh %56 : vector<2x32xf32>
    %58 = vector.extract_strided_slice %43 {offsets = [0, 96], sizes = [2, 32], strides = [1, 1]} : vector<2x128xf32> to vector<2x32xf32>
    %59 = arith.negf %58 : vector<2x32xf32>
    %60 = math.exp %59 : vector<2x32xf32>
    %cst_23 = arith.constant 1.000000e+00 : f32
    %61 = vector.broadcast %cst_23 : f32 to vector<2x32xf32>
    %62 = arith.addf %61, %60 : vector<2x32xf32>
    %63 = arith.divf %61, %62 : vector<2x32xf32>
    %64 = arith.mulf %55, %6 : vector<2x32xf32>
    %65 = arith.mulf %49, %57 : vector<2x32xf32>
    %66 = arith.addf %64, %65 : vector<2x32xf32>
    %67 = math.tanh %66 : vector<2x32xf32>
    %68 = arith.mulf %63, %67 : vector<2x32xf32>
    %c1 = arith.constant 1 : index
    %c0_24 = arith.constant 0 : index
    %c0_25 = arith.constant 0 : index
    %69 = vector.load %arg0[%c1, %c0_24, %c0_25] : memref<8x2x6xf32, #tpu.memory_space<vmem>>, vector<1x2x6xf32>
    %70 = vector.shape_cast %69 : vector<1x2x6xf32> to vector<2x6xf32>
    %cst_26 = arith.constant dense<0.000000e+00> : vector<2x128xf32>
    %71 = tpu.matmul %70, %0, %cst_26 {dimension_numbers = #tpu.dot_dimension_numbers<[1], [0], [0], [1], [0, 0, 1, 1], [], []>} : vector<2x6xf32>, vector<6x128xf32>, vector<2x128xf32> -> vector<2x128xf32>
    %cst_27 = arith.constant dense<0.000000e+00> : vector<2x128xf32>
    %72 = tpu.matmul %38, %1, %cst_27 {dimension_numbers = #tpu.dot_dimension_numbers<[1], [0], [0], [1], [0, 0, 1, 1], [], []>} : vector<2x32xf32>, vector<32x128xf32>, vector<2x128xf32> -> vector<2x128xf32>
    %73 = arith.addf %71, %72 : vector<2x128xf32>
    %74 = vector.broadcast %2 : vector<1x128xf32> to vector<2x128xf32>
    %75 = arith.addf %73, %74 : vector<2x128xf32>
    %76 = vector.extract_strided_slice %75 {offsets = [0, 0], sizes = [2, 32], strides = [1, 1]} : vector<2x128xf32> to vector<2x32xf32>
    %77 = arith.negf %76 : vector<2x32xf32>
    %78 = math.exp %77 : vector<2x32xf32>
    %cst_28 = arith.constant 1.000000e+00 : f32
    %79 = vector.broadcast %cst_28 : f32 to vector<2x32xf32>
    %80 = arith.addf %79, %78 : vector<2x32xf32>
    %81 = arith.divf %79, %80 : vector<2x32xf32>
    %82 = vector.extract_strided_slice %75 {offsets = [0, 32], sizes = [2, 32], strides = [1, 1]} : vector<2x128xf32> to vector<2x32xf32>
    %83 = arith.negf %82 : vector<2x32xf32>
    %84 = math.exp %83 : vector<2x32xf32>
    %cst_29 = arith.constant 1.000000e+00 : f32
    %85 = vector.broadcast %cst_29 : f32 to vector<2x32xf32>
    %86 = arith.addf %85, %84 : vector<2x32xf32>
    %87 = arith.divf %85, %86 : vector<2x32xf32>
    %88 = vector.extract_strided_slice %75 {offsets = [0, 64], sizes = [2, 32], strides = [1, 1]} : vector<2x128xf32> to vector<2x32xf32>
    %89 = math.tanh %88 : vector<2x32xf32>
    %90 = vector.extract_strided_slice %75 {offsets = [0, 96], sizes = [2, 32], strides = [1, 1]} : vector<2x128xf32> to vector<2x32xf32>
    %91 = arith.negf %90 : vector<2x32xf32>
    %92 = math.exp %91 : vector<2x32xf32>
    %cst_30 = arith.constant 1.000000e+00 : f32
    %93 = vector.broadcast %cst_30 : f32 to vector<2x32xf32>
    %94 = arith.addf %93, %92 : vector<2x32xf32>
    %95 = arith.divf %93, %94 : vector<2x32xf32>
    %96 = arith.mulf %87, %36 : vector<2x32xf32>
    %97 = arith.mulf %81, %89 : vector<2x32xf32>
    %98 = arith.addf %96, %97 : vector<2x32xf32>
    %99 = math.tanh %98 : vector<2x32xf32>
    %100 = arith.mulf %95, %99 : vector<2x32xf32>
    %cst_31 = arith.constant dense<0.000000e+00> : vector<2x128xf32>
    %101 = tpu.matmul %100, %3, %cst_31 {dimension_numbers = #tpu.dot_dimension_numbers<[1], [0], [0], [1], [0, 0, 1, 1], [], []>} : vector<2x32xf32>, vector<32x128xf32>, vector<2x128xf32> -> vector<2x128xf32>
    %cst_32 = arith.constant dense<0.000000e+00> : vector<2x128xf32>
    %102 = tpu.matmul %68, %4, %cst_32 {dimension_numbers = #tpu.dot_dimension_numbers<[1], [0], [0], [1], [0, 0, 1, 1], [], []>} : vector<2x32xf32>, vector<32x128xf32>, vector<2x128xf32> -> vector<2x128xf32>
    %103 = arith.addf %101, %102 : vector<2x128xf32>
    %104 = vector.broadcast %5 : vector<1x128xf32> to vector<2x128xf32>
    %105 = arith.addf %103, %104 : vector<2x128xf32>
    %106 = vector.extract_strided_slice %105 {offsets = [0, 0], sizes = [2, 32], strides = [1, 1]} : vector<2x128xf32> to vector<2x32xf32>
    %107 = arith.negf %106 : vector<2x32xf32>
    %108 = math.exp %107 : vector<2x32xf32>
    %cst_33 = arith.constant 1.000000e+00 : f32
    %109 = vector.broadcast %cst_33 : f32 to vector<2x32xf32>
    %110 = arith.addf %109, %108 : vector<2x32xf32>
    %111 = arith.divf %109, %110 : vector<2x32xf32>
    %112 = vector.extract_strided_slice %105 {offsets = [0, 32], sizes = [2, 32], strides = [1, 1]} : vector<2x128xf32> to vector<2x32xf32>
    %113 = arith.negf %112 : vector<2x32xf32>
    %114 = math.exp %113 : vector<2x32xf32>
    %cst_34 = arith.constant 1.000000e+00 : f32
    %115 = vector.broadcast %cst_34 : f32 to vector<2x32xf32>
    %116 = arith.addf %115, %114 : vector<2x32xf32>
    %117 = arith.divf %115, %116 : vector<2x32xf32>
    %118 = vector.extract_strided_slice %105 {offsets = [0, 64], sizes = [2, 32], strides = [1, 1]} : vector<2x128xf32> to vector<2x32xf32>
    %119 = math.tanh %118 : vector<2x32xf32>
    %120 = vector.extract_strided_slice %105 {offsets = [0, 96], sizes = [2, 32], strides = [1, 1]} : vector<2x128xf32> to vector<2x32xf32>
    %121 = arith.negf %120 : vector<2x32xf32>
    %122 = math.exp %121 : vector<2x32xf32>
    %cst_35 = arith.constant 1.000000e+00 : f32
    %123 = vector.broadcast %cst_35 : f32 to vector<2x32xf32>
    %124 = arith.addf %123, %122 : vector<2x32xf32>
    %125 = arith.divf %123, %124 : vector<2x32xf32>
    %126 = arith.mulf %117, %66 : vector<2x32xf32>
    %127 = arith.mulf %111, %119 : vector<2x32xf32>
    %128 = arith.addf %126, %127 : vector<2x32xf32>
    %129 = math.tanh %128 : vector<2x32xf32>
    %130 = arith.mulf %125, %129 : vector<2x32xf32>
    %c2 = arith.constant 2 : index
    %c0_36 = arith.constant 0 : index
    %c0_37 = arith.constant 0 : index
    %131 = vector.load %arg0[%c2, %c0_36, %c0_37] : memref<8x2x6xf32, #tpu.memory_space<vmem>>, vector<1x2x6xf32>
    %132 = vector.shape_cast %131 : vector<1x2x6xf32> to vector<2x6xf32>
    %cst_38 = arith.constant dense<0.000000e+00> : vector<2x128xf32>
    %133 = tpu.matmul %132, %0, %cst_38 {dimension_numbers = #tpu.dot_dimension_numbers<[1], [0], [0], [1], [0, 0, 1, 1], [], []>} : vector<2x6xf32>, vector<6x128xf32>, vector<2x128xf32> -> vector<2x128xf32>
    %cst_39 = arith.constant dense<0.000000e+00> : vector<2x128xf32>
    %134 = tpu.matmul %100, %1, %cst_39 {dimension_numbers = #tpu.dot_dimension_numbers<[1], [0], [0], [1], [0, 0, 1, 1], [], []>} : vector<2x32xf32>, vector<32x128xf32>, vector<2x128xf32> -> vector<2x128xf32>
    %135 = arith.addf %133, %134 : vector<2x128xf32>
    %136 = vector.broadcast %2 : vector<1x128xf32> to vector<2x128xf32>
    %137 = arith.addf %135, %136 : vector<2x128xf32>
    %138 = vector.extract_strided_slice %137 {offsets = [0, 0], sizes = [2, 32], strides = [1, 1]} : vector<2x128xf32> to vector<2x32xf32>
    %139 = arith.negf %138 : vector<2x32xf32>
    %140 = math.exp %139 : vector<2x32xf32>
    %cst_40 = arith.constant 1.000000e+00 : f32
    %141 = vector.broadcast %cst_40 : f32 to vector<2x32xf32>
    %142 = arith.addf %141, %140 : vector<2x32xf32>
    %143 = arith.divf %141, %142 : vector<2x32xf32>
    %144 = vector.extract_strided_slice %137 {offsets = [0, 32], sizes = [2, 32], strides = [1, 1]} : vector<2x128xf32> to vector<2x32xf32>
    %145 = arith.negf %144 : vector<2x32xf32>
    %146 = math.exp %145 : vector<2x32xf32>
    %cst_41 = arith.constant 1.000000e+00 : f32
    %147 = vector.broadcast %cst_41 : f32 to vector<2x32xf32>
    %148 = arith.addf %147, %146 : vector<2x32xf32>
    %149 = arith.divf %147, %148 : vector<2x32xf32>
    %150 = vector.extract_strided_slice %137 {offsets = [0, 64], sizes = [2, 32], strides = [1, 1]} : vector<2x128xf32> to vector<2x32xf32>
    %151 = math.tanh %150 : vector<2x32xf32>
    %152 = vector.extract_strided_slice %137 {offsets = [0, 96], sizes = [2, 32], strides = [1, 1]} : vector<2x128xf32> to vector<2x32xf32>
    %153 = arith.negf %152 : vector<2x32xf32>
    %154 = math.exp %153 : vector<2x32xf32>
    %cst_42 = arith.constant 1.000000e+00 : f32
    %155 = vector.broadcast %cst_42 : f32 to vector<2x32xf32>
    %156 = arith.addf %155, %154 : vector<2x32xf32>
    %157 = arith.divf %155, %156 : vector<2x32xf32>
    %158 = arith.mulf %149, %98 : vector<2x32xf32>
    %159 = arith.mulf %143, %151 : vector<2x32xf32>
    %160 = arith.addf %158, %159 : vector<2x32xf32>
    %161 = math.tanh %160 : vector<2x32xf32>
    %162 = arith.mulf %157, %161 : vector<2x32xf32>
    %cst_43 = arith.constant dense<0.000000e+00> : vector<2x128xf32>
    %163 = tpu.matmul %162, %3, %cst_43 {dimension_numbers = #tpu.dot_dimension_numbers<[1], [0], [0], [1], [0, 0, 1, 1], [], []>} : vector<2x32xf32>, vector<32x128xf32>, vector<2x128xf32> -> vector<2x128xf32>
    %cst_44 = arith.constant dense<0.000000e+00> : vector<2x128xf32>
    %164 = tpu.matmul %130, %4, %cst_44 {dimension_numbers = #tpu.dot_dimension_numbers<[1], [0], [0], [1], [0, 0, 1, 1], [], []>} : vector<2x32xf32>, vector<32x128xf32>, vector<2x128xf32> -> vector<2x128xf32>
    %165 = arith.addf %163, %164 : vector<2x128xf32>
    %166 = vector.broadcast %5 : vector<1x128xf32> to vector<2x128xf32>
    %167 = arith.addf %165, %166 : vector<2x128xf32>
    %168 = vector.extract_strided_slice %167 {offsets = [0, 0], sizes = [2, 32], strides = [1, 1]} : vector<2x128xf32> to vector<2x32xf32>
    %169 = arith.negf %168 : vector<2x32xf32>
    %170 = math.exp %169 : vector<2x32xf32>
    %cst_45 = arith.constant 1.000000e+00 : f32
    %171 = vector.broadcast %cst_45 : f32 to vector<2x32xf32>
    %172 = arith.addf %171, %170 : vector<2x32xf32>
    %173 = arith.divf %171, %172 : vector<2x32xf32>
    %174 = vector.extract_strided_slice %167 {offsets = [0, 32], sizes = [2, 32], strides = [1, 1]} : vector<2x128xf32> to vector<2x32xf32>
    %175 = arith.negf %174 : vector<2x32xf32>
    %176 = math.exp %175 : vector<2x32xf32>
    %cst_46 = arith.constant 1.000000e+00 : f32
    %177 = vector.broadcast %cst_46 : f32 to vector<2x32xf32>
    %178 = arith.addf %177, %176 : vector<2x32xf32>
    %179 = arith.divf %177, %178 : vector<2x32xf32>
    %180 = vector.extract_strided_slice %167 {offsets = [0, 64], sizes = [2, 32], strides = [1, 1]} : vector<2x128xf32> to vector<2x32xf32>
    %181 = math.tanh %180 : vector<2x32xf32>
    %182 = vector.extract_strided_slice %167 {offsets = [0, 96], sizes = [2, 32], strides = [1, 1]} : vector<2x128xf32> to vector<2x32xf32>
    %183 = arith.negf %182 : vector<2x32xf32>
    %184 = math.exp %183 : vector<2x32xf32>
    %cst_47 = arith.constant 1.000000e+00 : f32
    %185 = vector.broadcast %cst_47 : f32 to vector<2x32xf32>
    %186 = arith.addf %185, %184 : vector<2x32xf32>
    %187 = arith.divf %185, %186 : vector<2x32xf32>
    %188 = arith.mulf %179, %128 : vector<2x32xf32>
    %189 = arith.mulf %173, %181 : vector<2x32xf32>
    %190 = arith.addf %188, %189 : vector<2x32xf32>
    %191 = math.tanh %190 : vector<2x32xf32>
    %192 = arith.mulf %187, %191 : vector<2x32xf32>
    %c3 = arith.constant 3 : index
    %c0_48 = arith.constant 0 : index
    %c0_49 = arith.constant 0 : index
    %193 = vector.load %arg0[%c3, %c0_48, %c0_49] : memref<8x2x6xf32, #tpu.memory_space<vmem>>, vector<1x2x6xf32>
    %194 = vector.shape_cast %193 : vector<1x2x6xf32> to vector<2x6xf32>
    %cst_50 = arith.constant dense<0.000000e+00> : vector<2x128xf32>
    %195 = tpu.matmul %194, %0, %cst_50 {dimension_numbers = #tpu.dot_dimension_numbers<[1], [0], [0], [1], [0, 0, 1, 1], [], []>} : vector<2x6xf32>, vector<6x128xf32>, vector<2x128xf32> -> vector<2x128xf32>
    %cst_51 = arith.constant dense<0.000000e+00> : vector<2x128xf32>
    %196 = tpu.matmul %162, %1, %cst_51 {dimension_numbers = #tpu.dot_dimension_numbers<[1], [0], [0], [1], [0, 0, 1, 1], [], []>} : vector<2x32xf32>, vector<32x128xf32>, vector<2x128xf32> -> vector<2x128xf32>
    %197 = arith.addf %195, %196 : vector<2x128xf32>
    %198 = vector.broadcast %2 : vector<1x128xf32> to vector<2x128xf32>
    %199 = arith.addf %197, %198 : vector<2x128xf32>
    %200 = vector.extract_strided_slice %199 {offsets = [0, 0], sizes = [2, 32], strides = [1, 1]} : vector<2x128xf32> to vector<2x32xf32>
    %201 = arith.negf %200 : vector<2x32xf32>
    %202 = math.exp %201 : vector<2x32xf32>
    %cst_52 = arith.constant 1.000000e+00 : f32
    %203 = vector.broadcast %cst_52 : f32 to vector<2x32xf32>
    %204 = arith.addf %203, %202 : vector<2x32xf32>
    %205 = arith.divf %203, %204 : vector<2x32xf32>
    %206 = vector.extract_strided_slice %199 {offsets = [0, 32], sizes = [2, 32], strides = [1, 1]} : vector<2x128xf32> to vector<2x32xf32>
    %207 = arith.negf %206 : vector<2x32xf32>
    %208 = math.exp %207 : vector<2x32xf32>
    %cst_53 = arith.constant 1.000000e+00 : f32
    %209 = vector.broadcast %cst_53 : f32 to vector<2x32xf32>
    %210 = arith.addf %209, %208 : vector<2x32xf32>
    %211 = arith.divf %209, %210 : vector<2x32xf32>
    %212 = vector.extract_strided_slice %199 {offsets = [0, 64], sizes = [2, 32], strides = [1, 1]} : vector<2x128xf32> to vector<2x32xf32>
    %213 = math.tanh %212 : vector<2x32xf32>
    %214 = vector.extract_strided_slice %199 {offsets = [0, 96], sizes = [2, 32], strides = [1, 1]} : vector<2x128xf32> to vector<2x32xf32>
    %215 = arith.negf %214 : vector<2x32xf32>
    %216 = math.exp %215 : vector<2x32xf32>
    %cst_54 = arith.constant 1.000000e+00 : f32
    %217 = vector.broadcast %cst_54 : f32 to vector<2x32xf32>
    %218 = arith.addf %217, %216 : vector<2x32xf32>
    %219 = arith.divf %217, %218 : vector<2x32xf32>
    %220 = arith.mulf %211, %160 : vector<2x32xf32>
    %221 = arith.mulf %205, %213 : vector<2x32xf32>
    %222 = arith.addf %220, %221 : vector<2x32xf32>
    %223 = math.tanh %222 : vector<2x32xf32>
    %224 = arith.mulf %219, %223 : vector<2x32xf32>
    %cst_55 = arith.constant dense<0.000000e+00> : vector<2x128xf32>
    %225 = tpu.matmul %224, %3, %cst_55 {dimension_numbers = #tpu.dot_dimension_numbers<[1], [0], [0], [1], [0, 0, 1, 1], [], []>} : vector<2x32xf32>, vector<32x128xf32>, vector<2x128xf32> -> vector<2x128xf32>
    %cst_56 = arith.constant dense<0.000000e+00> : vector<2x128xf32>
    %226 = tpu.matmul %192, %4, %cst_56 {dimension_numbers = #tpu.dot_dimension_numbers<[1], [0], [0], [1], [0, 0, 1, 1], [], []>} : vector<2x32xf32>, vector<32x128xf32>, vector<2x128xf32> -> vector<2x128xf32>
    %227 = arith.addf %225, %226 : vector<2x128xf32>
    %228 = vector.broadcast %5 : vector<1x128xf32> to vector<2x128xf32>
    %229 = arith.addf %227, %228 : vector<2x128xf32>
    %230 = vector.extract_strided_slice %229 {offsets = [0, 0], sizes = [2, 32], strides = [1, 1]} : vector<2x128xf32> to vector<2x32xf32>
    %231 = arith.negf %230 : vector<2x32xf32>
    %232 = math.exp %231 : vector<2x32xf32>
    %cst_57 = arith.constant 1.000000e+00 : f32
    %233 = vector.broadcast %cst_57 : f32 to vector<2x32xf32>
    %234 = arith.addf %233, %232 : vector<2x32xf32>
    %235 = arith.divf %233, %234 : vector<2x32xf32>
    %236 = vector.extract_strided_slice %229 {offsets = [0, 32], sizes = [2, 32], strides = [1, 1]} : vector<2x128xf32> to vector<2x32xf32>
    %237 = arith.negf %236 : vector<2x32xf32>
    %238 = math.exp %237 : vector<2x32xf32>
    %cst_58 = arith.constant 1.000000e+00 : f32
    %239 = vector.broadcast %cst_58 : f32 to vector<2x32xf32>
    %240 = arith.addf %239, %238 : vector<2x32xf32>
    %241 = arith.divf %239, %240 : vector<2x32xf32>
    %242 = vector.extract_strided_slice %229 {offsets = [0, 64], sizes = [2, 32], strides = [1, 1]} : vector<2x128xf32> to vector<2x32xf32>
    %243 = math.tanh %242 : vector<2x32xf32>
    %244 = vector.extract_strided_slice %229 {offsets = [0, 96], sizes = [2, 32], strides = [1, 1]} : vector<2x128xf32> to vector<2x32xf32>
    %245 = arith.negf %244 : vector<2x32xf32>
    %246 = math.exp %245 : vector<2x32xf32>
    %cst_59 = arith.constant 1.000000e+00 : f32
    %247 = vector.broadcast %cst_59 : f32 to vector<2x32xf32>
    %248 = arith.addf %247, %246 : vector<2x32xf32>
    %249 = arith.divf %247, %248 : vector<2x32xf32>
    %250 = arith.mulf %241, %190 : vector<2x32xf32>
    %251 = arith.mulf %235, %243 : vector<2x32xf32>
    %252 = arith.addf %250, %251 : vector<2x32xf32>
    %253 = math.tanh %252 : vector<2x32xf32>
    %254 = arith.mulf %249, %253 : vector<2x32xf32>
    %c4 = arith.constant 4 : index
    %c0_60 = arith.constant 0 : index
    %c0_61 = arith.constant 0 : index
    %255 = vector.load %arg0[%c4, %c0_60, %c0_61] : memref<8x2x6xf32, #tpu.memory_space<vmem>>, vector<1x2x6xf32>
    %256 = vector.shape_cast %255 : vector<1x2x6xf32> to vector<2x6xf32>
    %cst_62 = arith.constant dense<0.000000e+00> : vector<2x128xf32>
    %257 = tpu.matmul %256, %0, %cst_62 {dimension_numbers = #tpu.dot_dimension_numbers<[1], [0], [0], [1], [0, 0, 1, 1], [], []>} : vector<2x6xf32>, vector<6x128xf32>, vector<2x128xf32> -> vector<2x128xf32>
    %cst_63 = arith.constant dense<0.000000e+00> : vector<2x128xf32>
    %258 = tpu.matmul %224, %1, %cst_63 {dimension_numbers = #tpu.dot_dimension_numbers<[1], [0], [0], [1], [0, 0, 1, 1], [], []>} : vector<2x32xf32>, vector<32x128xf32>, vector<2x128xf32> -> vector<2x128xf32>
    %259 = arith.addf %257, %258 : vector<2x128xf32>
    %260 = vector.broadcast %2 : vector<1x128xf32> to vector<2x128xf32>
    %261 = arith.addf %259, %260 : vector<2x128xf32>
    %262 = vector.extract_strided_slice %261 {offsets = [0, 0], sizes = [2, 32], strides = [1, 1]} : vector<2x128xf32> to vector<2x32xf32>
    %263 = arith.negf %262 : vector<2x32xf32>
    %264 = math.exp %263 : vector<2x32xf32>
    %cst_64 = arith.constant 1.000000e+00 : f32
    %265 = vector.broadcast %cst_64 : f32 to vector<2x32xf32>
    %266 = arith.addf %265, %264 : vector<2x32xf32>
    %267 = arith.divf %265, %266 : vector<2x32xf32>
    %268 = vector.extract_strided_slice %261 {offsets = [0, 32], sizes = [2, 32], strides = [1, 1]} : vector<2x128xf32> to vector<2x32xf32>
    %269 = arith.negf %268 : vector<2x32xf32>
    %270 = math.exp %269 : vector<2x32xf32>
    %cst_65 = arith.constant 1.000000e+00 : f32
    %271 = vector.broadcast %cst_65 : f32 to vector<2x32xf32>
    %272 = arith.addf %271, %270 : vector<2x32xf32>
    %273 = arith.divf %271, %272 : vector<2x32xf32>
    %274 = vector.extract_strided_slice %261 {offsets = [0, 64], sizes = [2, 32], strides = [1, 1]} : vector<2x128xf32> to vector<2x32xf32>
    %275 = math.tanh %274 : vector<2x32xf32>
    %276 = vector.extract_strided_slice %261 {offsets = [0, 96], sizes = [2, 32], strides = [1, 1]} : vector<2x128xf32> to vector<2x32xf32>
    %277 = arith.negf %276 : vector<2x32xf32>
    %278 = math.exp %277 : vector<2x32xf32>
    %cst_66 = arith.constant 1.000000e+00 : f32
    %279 = vector.broadcast %cst_66 : f32 to vector<2x32xf32>
    %280 = arith.addf %279, %278 : vector<2x32xf32>
    %281 = arith.divf %279, %280 : vector<2x32xf32>
    %282 = arith.mulf %273, %222 : vector<2x32xf32>
    %283 = arith.mulf %267, %275 : vector<2x32xf32>
    %284 = arith.addf %282, %283 : vector<2x32xf32>
    %285 = math.tanh %284 : vector<2x32xf32>
    %286 = arith.mulf %281, %285 : vector<2x32xf32>
    %cst_67 = arith.constant dense<0.000000e+00> : vector<2x128xf32>
    %287 = tpu.matmul %286, %3, %cst_67 {dimension_numbers = #tpu.dot_dimension_numbers<[1], [0], [0], [1], [0, 0, 1, 1], [], []>} : vector<2x32xf32>, vector<32x128xf32>, vector<2x128xf32> -> vector<2x128xf32>
    %cst_68 = arith.constant dense<0.000000e+00> : vector<2x128xf32>
    %288 = tpu.matmul %254, %4, %cst_68 {dimension_numbers = #tpu.dot_dimension_numbers<[1], [0], [0], [1], [0, 0, 1, 1], [], []>} : vector<2x32xf32>, vector<32x128xf32>, vector<2x128xf32> -> vector<2x128xf32>
    %289 = arith.addf %287, %288 : vector<2x128xf32>
    %290 = vector.broadcast %5 : vector<1x128xf32> to vector<2x128xf32>
    %291 = arith.addf %289, %290 : vector<2x128xf32>
    %292 = vector.extract_strided_slice %291 {offsets = [0, 0], sizes = [2, 32], strides = [1, 1]} : vector<2x128xf32> to vector<2x32xf32>
    %293 = arith.negf %292 : vector<2x32xf32>
    %294 = math.exp %293 : vector<2x32xf32>
    %cst_69 = arith.constant 1.000000e+00 : f32
    %295 = vector.broadcast %cst_69 : f32 to vector<2x32xf32>
    %296 = arith.addf %295, %294 : vector<2x32xf32>
    %297 = arith.divf %295, %296 : vector<2x32xf32>
    %298 = vector.extract_strided_slice %291 {offsets = [0, 32], sizes = [2, 32], strides = [1, 1]} : vector<2x128xf32> to vector<2x32xf32>
    %299 = arith.negf %298 : vector<2x32xf32>
    %300 = math.exp %299 : vector<2x32xf32>
    %cst_70 = arith.constant 1.000000e+00 : f32
    %301 = vector.broadcast %cst_70 : f32 to vector<2x32xf32>
    %302 = arith.addf %301, %300 : vector<2x32xf32>
    %303 = arith.divf %301, %302 : vector<2x32xf32>
    %304 = vector.extract_strided_slice %291 {offsets = [0, 64], sizes = [2, 32], strides = [1, 1]} : vector<2x128xf32> to vector<2x32xf32>
    %305 = math.tanh %304 : vector<2x32xf32>
    %306 = vector.extract_strided_slice %291 {offsets = [0, 96], sizes = [2, 32], strides = [1, 1]} : vector<2x128xf32> to vector<2x32xf32>
    %307 = arith.negf %306 : vector<2x32xf32>
    %308 = math.exp %307 : vector<2x32xf32>
    %cst_71 = arith.constant 1.000000e+00 : f32
    %309 = vector.broadcast %cst_71 : f32 to vector<2x32xf32>
    %310 = arith.addf %309, %308 : vector<2x32xf32>
    %311 = arith.divf %309, %310 : vector<2x32xf32>
    %312 = arith.mulf %303, %252 : vector<2x32xf32>
    %313 = arith.mulf %297, %305 : vector<2x32xf32>
    %314 = arith.addf %312, %313 : vector<2x32xf32>
    %315 = math.tanh %314 : vector<2x32xf32>
    %316 = arith.mulf %311, %315 : vector<2x32xf32>
    %c5 = arith.constant 5 : index
    %c0_72 = arith.constant 0 : index
    %c0_73 = arith.constant 0 : index
    %317 = vector.load %arg0[%c5, %c0_72, %c0_73] : memref<8x2x6xf32, #tpu.memory_space<vmem>>, vector<1x2x6xf32>
    %318 = vector.shape_cast %317 : vector<1x2x6xf32> to vector<2x6xf32>
    %cst_74 = arith.constant dense<0.000000e+00> : vector<2x128xf32>
    %319 = tpu.matmul %318, %0, %cst_74 {dimension_numbers = #tpu.dot_dimension_numbers<[1], [0], [0], [1], [0, 0, 1, 1], [], []>} : vector<2x6xf32>, vector<6x128xf32>, vector<2x128xf32> -> vector<2x128xf32>
    %cst_75 = arith.constant dense<0.000000e+00> : vector<2x128xf32>
    %320 = tpu.matmul %286, %1, %cst_75 {dimension_numbers = #tpu.dot_dimension_numbers<[1], [0], [0], [1], [0, 0, 1, 1], [], []>} : vector<2x32xf32>, vector<32x128xf32>, vector<2x128xf32> -> vector<2x128xf32>
    %321 = arith.addf %319, %320 : vector<2x128xf32>
    %322 = vector.broadcast %2 : vector<1x128xf32> to vector<2x128xf32>
    %323 = arith.addf %321, %322 : vector<2x128xf32>
    %324 = vector.extract_strided_slice %323 {offsets = [0, 0], sizes = [2, 32], strides = [1, 1]} : vector<2x128xf32> to vector<2x32xf32>
    %325 = arith.negf %324 : vector<2x32xf32>
    %326 = math.exp %325 : vector<2x32xf32>
    %cst_76 = arith.constant 1.000000e+00 : f32
    %327 = vector.broadcast %cst_76 : f32 to vector<2x32xf32>
    %328 = arith.addf %327, %326 : vector<2x32xf32>
    %329 = arith.divf %327, %328 : vector<2x32xf32>
    %330 = vector.extract_strided_slice %323 {offsets = [0, 32], sizes = [2, 32], strides = [1, 1]} : vector<2x128xf32> to vector<2x32xf32>
    %331 = arith.negf %330 : vector<2x32xf32>
    %332 = math.exp %331 : vector<2x32xf32>
    %cst_77 = arith.constant 1.000000e+00 : f32
    %333 = vector.broadcast %cst_77 : f32 to vector<2x32xf32>
    %334 = arith.addf %333, %332 : vector<2x32xf32>
    %335 = arith.divf %333, %334 : vector<2x32xf32>
    %336 = vector.extract_strided_slice %323 {offsets = [0, 64], sizes = [2, 32], strides = [1, 1]} : vector<2x128xf32> to vector<2x32xf32>
    %337 = math.tanh %336 : vector<2x32xf32>
    %338 = vector.extract_strided_slice %323 {offsets = [0, 96], sizes = [2, 32], strides = [1, 1]} : vector<2x128xf32> to vector<2x32xf32>
    %339 = arith.negf %338 : vector<2x32xf32>
    %340 = math.exp %339 : vector<2x32xf32>
    %cst_78 = arith.constant 1.000000e+00 : f32
    %341 = vector.broadcast %cst_78 : f32 to vector<2x32xf32>
    %342 = arith.addf %341, %340 : vector<2x32xf32>
    %343 = arith.divf %341, %342 : vector<2x32xf32>
    %344 = arith.mulf %335, %284 : vector<2x32xf32>
    %345 = arith.mulf %329, %337 : vector<2x32xf32>
    %346 = arith.addf %344, %345 : vector<2x32xf32>
    %347 = math.tanh %346 : vector<2x32xf32>
    %348 = arith.mulf %343, %347 : vector<2x32xf32>
    %cst_79 = arith.constant dense<0.000000e+00> : vector<2x128xf32>
    %349 = tpu.matmul %348, %3, %cst_79 {dimension_numbers = #tpu.dot_dimension_numbers<[1], [0], [0], [1], [0, 0, 1, 1], [], []>} : vector<2x32xf32>, vector<32x128xf32>, vector<2x128xf32> -> vector<2x128xf32>
    %cst_80 = arith.constant dense<0.000000e+00> : vector<2x128xf32>
    %350 = tpu.matmul %316, %4, %cst_80 {dimension_numbers = #tpu.dot_dimension_numbers<[1], [0], [0], [1], [0, 0, 1, 1], [], []>} : vector<2x32xf32>, vector<32x128xf32>, vector<2x128xf32> -> vector<2x128xf32>
    %351 = arith.addf %349, %350 : vector<2x128xf32>
    %352 = vector.broadcast %5 : vector<1x128xf32> to vector<2x128xf32>
    %353 = arith.addf %351, %352 : vector<2x128xf32>
    %354 = vector.extract_strided_slice %353 {offsets = [0, 0], sizes = [2, 32], strides = [1, 1]} : vector<2x128xf32> to vector<2x32xf32>
    %355 = arith.negf %354 : vector<2x32xf32>
    %356 = math.exp %355 : vector<2x32xf32>
    %cst_81 = arith.constant 1.000000e+00 : f32
    %357 = vector.broadcast %cst_81 : f32 to vector<2x32xf32>
    %358 = arith.addf %357, %356 : vector<2x32xf32>
    %359 = arith.divf %357, %358 : vector<2x32xf32>
    %360 = vector.extract_strided_slice %353 {offsets = [0, 32], sizes = [2, 32], strides = [1, 1]} : vector<2x128xf32> to vector<2x32xf32>
    %361 = arith.negf %360 : vector<2x32xf32>
    %362 = math.exp %361 : vector<2x32xf32>
    %cst_82 = arith.constant 1.000000e+00 : f32
    %363 = vector.broadcast %cst_82 : f32 to vector<2x32xf32>
    %364 = arith.addf %363, %362 : vector<2x32xf32>
    %365 = arith.divf %363, %364 : vector<2x32xf32>
    %366 = vector.extract_strided_slice %353 {offsets = [0, 64], sizes = [2, 32], strides = [1, 1]} : vector<2x128xf32> to vector<2x32xf32>
    %367 = math.tanh %366 : vector<2x32xf32>
    %368 = vector.extract_strided_slice %353 {offsets = [0, 96], sizes = [2, 32], strides = [1, 1]} : vector<2x128xf32> to vector<2x32xf32>
    %369 = arith.negf %368 : vector<2x32xf32>
    %370 = math.exp %369 : vector<2x32xf32>
    %cst_83 = arith.constant 1.000000e+00 : f32
    %371 = vector.broadcast %cst_83 : f32 to vector<2x32xf32>
    %372 = arith.addf %371, %370 : vector<2x32xf32>
    %373 = arith.divf %371, %372 : vector<2x32xf32>
    %374 = arith.mulf %365, %314 : vector<2x32xf32>
    %375 = arith.mulf %359, %367 : vector<2x32xf32>
    %376 = arith.addf %374, %375 : vector<2x32xf32>
    %377 = math.tanh %376 : vector<2x32xf32>
    %378 = arith.mulf %373, %377 : vector<2x32xf32>
    %c6 = arith.constant 6 : index
    %c0_84 = arith.constant 0 : index
    %c0_85 = arith.constant 0 : index
    %379 = vector.load %arg0[%c6, %c0_84, %c0_85] : memref<8x2x6xf32, #tpu.memory_space<vmem>>, vector<1x2x6xf32>
    %380 = vector.shape_cast %379 : vector<1x2x6xf32> to vector<2x6xf32>
    %cst_86 = arith.constant dense<0.000000e+00> : vector<2x128xf32>
    %381 = tpu.matmul %380, %0, %cst_86 {dimension_numbers = #tpu.dot_dimension_numbers<[1], [0], [0], [1], [0, 0, 1, 1], [], []>} : vector<2x6xf32>, vector<6x128xf32>, vector<2x128xf32> -> vector<2x128xf32>
    %cst_87 = arith.constant dense<0.000000e+00> : vector<2x128xf32>
    %382 = tpu.matmul %348, %1, %cst_87 {dimension_numbers = #tpu.dot_dimension_numbers<[1], [0], [0], [1], [0, 0, 1, 1], [], []>} : vector<2x32xf32>, vector<32x128xf32>, vector<2x128xf32> -> vector<2x128xf32>
    %383 = arith.addf %381, %382 : vector<2x128xf32>
    %384 = vector.broadcast %2 : vector<1x128xf32> to vector<2x128xf32>
    %385 = arith.addf %383, %384 : vector<2x128xf32>
    %386 = vector.extract_strided_slice %385 {offsets = [0, 0], sizes = [2, 32], strides = [1, 1]} : vector<2x128xf32> to vector<2x32xf32>
    %387 = arith.negf %386 : vector<2x32xf32>
    %388 = math.exp %387 : vector<2x32xf32>
    %cst_88 = arith.constant 1.000000e+00 : f32
    %389 = vector.broadcast %cst_88 : f32 to vector<2x32xf32>
    %390 = arith.addf %389, %388 : vector<2x32xf32>
    %391 = arith.divf %389, %390 : vector<2x32xf32>
    %392 = vector.extract_strided_slice %385 {offsets = [0, 32], sizes = [2, 32], strides = [1, 1]} : vector<2x128xf32> to vector<2x32xf32>
    %393 = arith.negf %392 : vector<2x32xf32>
    %394 = math.exp %393 : vector<2x32xf32>
    %cst_89 = arith.constant 1.000000e+00 : f32
    %395 = vector.broadcast %cst_89 : f32 to vector<2x32xf32>
    %396 = arith.addf %395, %394 : vector<2x32xf32>
    %397 = arith.divf %395, %396 : vector<2x32xf32>
    %398 = vector.extract_strided_slice %385 {offsets = [0, 64], sizes = [2, 32], strides = [1, 1]} : vector<2x128xf32> to vector<2x32xf32>
    %399 = math.tanh %398 : vector<2x32xf32>
    %400 = vector.extract_strided_slice %385 {offsets = [0, 96], sizes = [2, 32], strides = [1, 1]} : vector<2x128xf32> to vector<2x32xf32>
    %401 = arith.negf %400 : vector<2x32xf32>
    %402 = math.exp %401 : vector<2x32xf32>
    %cst_90 = arith.constant 1.000000e+00 : f32
    %403 = vector.broadcast %cst_90 : f32 to vector<2x32xf32>
    %404 = arith.addf %403, %402 : vector<2x32xf32>
    %405 = arith.divf %403, %404 : vector<2x32xf32>
    %406 = arith.mulf %397, %346 : vector<2x32xf32>
    %407 = arith.mulf %391, %399 : vector<2x32xf32>
    %408 = arith.addf %406, %407 : vector<2x32xf32>
    %409 = math.tanh %408 : vector<2x32xf32>
    %410 = arith.mulf %405, %409 : vector<2x32xf32>
    %cst_91 = arith.constant dense<0.000000e+00> : vector<2x128xf32>
    %411 = tpu.matmul %410, %3, %cst_91 {dimension_numbers = #tpu.dot_dimension_numbers<[1], [0], [0], [1], [0, 0, 1, 1], [], []>} : vector<2x32xf32>, vector<32x128xf32>, vector<2x128xf32> -> vector<2x128xf32>
    %cst_92 = arith.constant dense<0.000000e+00> : vector<2x128xf32>
    %412 = tpu.matmul %378, %4, %cst_92 {dimension_numbers = #tpu.dot_dimension_numbers<[1], [0], [0], [1], [0, 0, 1, 1], [], []>} : vector<2x32xf32>, vector<32x128xf32>, vector<2x128xf32> -> vector<2x128xf32>
    %413 = arith.addf %411, %412 : vector<2x128xf32>
    %414 = vector.broadcast %5 : vector<1x128xf32> to vector<2x128xf32>
    %415 = arith.addf %413, %414 : vector<2x128xf32>
    %416 = vector.extract_strided_slice %415 {offsets = [0, 0], sizes = [2, 32], strides = [1, 1]} : vector<2x128xf32> to vector<2x32xf32>
    %417 = arith.negf %416 : vector<2x32xf32>
    %418 = math.exp %417 : vector<2x32xf32>
    %cst_93 = arith.constant 1.000000e+00 : f32
    %419 = vector.broadcast %cst_93 : f32 to vector<2x32xf32>
    %420 = arith.addf %419, %418 : vector<2x32xf32>
    %421 = arith.divf %419, %420 : vector<2x32xf32>
    %422 = vector.extract_strided_slice %415 {offsets = [0, 32], sizes = [2, 32], strides = [1, 1]} : vector<2x128xf32> to vector<2x32xf32>
    %423 = arith.negf %422 : vector<2x32xf32>
    %424 = math.exp %423 : vector<2x32xf32>
    %cst_94 = arith.constant 1.000000e+00 : f32
    %425 = vector.broadcast %cst_94 : f32 to vector<2x32xf32>
    %426 = arith.addf %425, %424 : vector<2x32xf32>
    %427 = arith.divf %425, %426 : vector<2x32xf32>
    %428 = vector.extract_strided_slice %415 {offsets = [0, 64], sizes = [2, 32], strides = [1, 1]} : vector<2x128xf32> to vector<2x32xf32>
    %429 = math.tanh %428 : vector<2x32xf32>
    %430 = vector.extract_strided_slice %415 {offsets = [0, 96], sizes = [2, 32], strides = [1, 1]} : vector<2x128xf32> to vector<2x32xf32>
    %431 = arith.negf %430 : vector<2x32xf32>
    %432 = math.exp %431 : vector<2x32xf32>
    %cst_95 = arith.constant 1.000000e+00 : f32
    %433 = vector.broadcast %cst_95 : f32 to vector<2x32xf32>
    %434 = arith.addf %433, %432 : vector<2x32xf32>
    %435 = arith.divf %433, %434 : vector<2x32xf32>
    %436 = arith.mulf %427, %376 : vector<2x32xf32>
    %437 = arith.mulf %421, %429 : vector<2x32xf32>
    %438 = arith.addf %436, %437 : vector<2x32xf32>
    %439 = math.tanh %438 : vector<2x32xf32>
    %440 = arith.mulf %435, %439 : vector<2x32xf32>
    %c7 = arith.constant 7 : index
    %c0_96 = arith.constant 0 : index
    %c0_97 = arith.constant 0 : index
    %441 = vector.load %arg0[%c7, %c0_96, %c0_97] : memref<8x2x6xf32, #tpu.memory_space<vmem>>, vector<1x2x6xf32>
    %442 = vector.shape_cast %441 : vector<1x2x6xf32> to vector<2x6xf32>
    %cst_98 = arith.constant dense<0.000000e+00> : vector<2x128xf32>
    %443 = tpu.matmul %442, %0, %cst_98 {dimension_numbers = #tpu.dot_dimension_numbers<[1], [0], [0], [1], [0, 0, 1, 1], [], []>} : vector<2x6xf32>, vector<6x128xf32>, vector<2x128xf32> -> vector<2x128xf32>
    %cst_99 = arith.constant dense<0.000000e+00> : vector<2x128xf32>
    %444 = tpu.matmul %410, %1, %cst_99 {dimension_numbers = #tpu.dot_dimension_numbers<[1], [0], [0], [1], [0, 0, 1, 1], [], []>} : vector<2x32xf32>, vector<32x128xf32>, vector<2x128xf32> -> vector<2x128xf32>
    %445 = arith.addf %443, %444 : vector<2x128xf32>
    %446 = vector.broadcast %2 : vector<1x128xf32> to vector<2x128xf32>
    %447 = arith.addf %445, %446 : vector<2x128xf32>
    %448 = vector.extract_strided_slice %447 {offsets = [0, 0], sizes = [2, 32], strides = [1, 1]} : vector<2x128xf32> to vector<2x32xf32>
    %449 = arith.negf %448 : vector<2x32xf32>
    %450 = math.exp %449 : vector<2x32xf32>
    %cst_100 = arith.constant 1.000000e+00 : f32
    %451 = vector.broadcast %cst_100 : f32 to vector<2x32xf32>
    %452 = arith.addf %451, %450 : vector<2x32xf32>
    %453 = arith.divf %451, %452 : vector<2x32xf32>
    %454 = vector.extract_strided_slice %447 {offsets = [0, 32], sizes = [2, 32], strides = [1, 1]} : vector<2x128xf32> to vector<2x32xf32>
    %455 = arith.negf %454 : vector<2x32xf32>
    %456 = math.exp %455 : vector<2x32xf32>
    %cst_101 = arith.constant 1.000000e+00 : f32
    %457 = vector.broadcast %cst_101 : f32 to vector<2x32xf32>
    %458 = arith.addf %457, %456 : vector<2x32xf32>
    %459 = arith.divf %457, %458 : vector<2x32xf32>
    %460 = vector.extract_strided_slice %447 {offsets = [0, 64], sizes = [2, 32], strides = [1, 1]} : vector<2x128xf32> to vector<2x32xf32>
    %461 = math.tanh %460 : vector<2x32xf32>
    %462 = vector.extract_strided_slice %447 {offsets = [0, 96], sizes = [2, 32], strides = [1, 1]} : vector<2x128xf32> to vector<2x32xf32>
    %463 = arith.negf %462 : vector<2x32xf32>
    %464 = math.exp %463 : vector<2x32xf32>
    %cst_102 = arith.constant 1.000000e+00 : f32
    %465 = vector.broadcast %cst_102 : f32 to vector<2x32xf32>
    %466 = arith.addf %465, %464 : vector<2x32xf32>
    %467 = arith.divf %465, %466 : vector<2x32xf32>
    %468 = arith.mulf %459, %408 : vector<2x32xf32>
    %469 = arith.mulf %453, %461 : vector<2x32xf32>
    %470 = arith.addf %468, %469 : vector<2x32xf32>
    %471 = math.tanh %470 : vector<2x32xf32>
    %472 = arith.mulf %467, %471 : vector<2x32xf32>
    %cst_103 = arith.constant dense<0.000000e+00> : vector<2x128xf32>
    %473 = tpu.matmul %472, %3, %cst_103 {dimension_numbers = #tpu.dot_dimension_numbers<[1], [0], [0], [1], [0, 0, 1, 1], [], []>} : vector<2x32xf32>, vector<32x128xf32>, vector<2x128xf32> -> vector<2x128xf32>
    %cst_104 = arith.constant dense<0.000000e+00> : vector<2x128xf32>
    %474 = tpu.matmul %440, %4, %cst_104 {dimension_numbers = #tpu.dot_dimension_numbers<[1], [0], [0], [1], [0, 0, 1, 1], [], []>} : vector<2x32xf32>, vector<32x128xf32>, vector<2x128xf32> -> vector<2x128xf32>
    %475 = arith.addf %473, %474 : vector<2x128xf32>
    %476 = vector.broadcast %5 : vector<1x128xf32> to vector<2x128xf32>
    %477 = arith.addf %475, %476 : vector<2x128xf32>
    %478 = vector.extract_strided_slice %477 {offsets = [0, 0], sizes = [2, 32], strides = [1, 1]} : vector<2x128xf32> to vector<2x32xf32>
    %479 = arith.negf %478 : vector<2x32xf32>
    %480 = math.exp %479 : vector<2x32xf32>
    %cst_105 = arith.constant 1.000000e+00 : f32
    %481 = vector.broadcast %cst_105 : f32 to vector<2x32xf32>
    %482 = arith.addf %481, %480 : vector<2x32xf32>
    %483 = arith.divf %481, %482 : vector<2x32xf32>
    %484 = vector.extract_strided_slice %477 {offsets = [0, 32], sizes = [2, 32], strides = [1, 1]} : vector<2x128xf32> to vector<2x32xf32>
    %485 = arith.negf %484 : vector<2x32xf32>
    %486 = math.exp %485 : vector<2x32xf32>
    %cst_106 = arith.constant 1.000000e+00 : f32
    %487 = vector.broadcast %cst_106 : f32 to vector<2x32xf32>
    %488 = arith.addf %487, %486 : vector<2x32xf32>
    %489 = arith.divf %487, %488 : vector<2x32xf32>
    %490 = vector.extract_strided_slice %477 {offsets = [0, 64], sizes = [2, 32], strides = [1, 1]} : vector<2x128xf32> to vector<2x32xf32>
    %491 = math.tanh %490 : vector<2x32xf32>
    %492 = vector.extract_strided_slice %477 {offsets = [0, 96], sizes = [2, 32], strides = [1, 1]} : vector<2x128xf32> to vector<2x32xf32>
    %493 = arith.negf %492 : vector<2x32xf32>
    %494 = math.exp %493 : vector<2x32xf32>
    %cst_107 = arith.constant 1.000000e+00 : f32
    %495 = vector.broadcast %cst_107 : f32 to vector<2x32xf32>
    %496 = arith.addf %495, %494 : vector<2x32xf32>
    %497 = arith.divf %495, %496 : vector<2x32xf32>
    %498 = arith.mulf %489, %438 : vector<2x32xf32>
    %499 = arith.mulf %483, %491 : vector<2x32xf32>
    %500 = arith.addf %498, %499 : vector<2x32xf32>
    %501 = math.tanh %500 : vector<2x32xf32>
    %502 = arith.mulf %497, %501 : vector<2x32xf32>
    %c0_108 = arith.constant 0 : index
    %c0_109 = arith.constant 0 : index
    %503 = vector.load %arg7[%c0_108, %c0_109] : memref<32x1xf32, #tpu.memory_space<vmem>>, vector<32x1xf32>
    %cst_110 = arith.constant dense<0.000000e+00> : vector<2x1xf32>
    %504 = tpu.matmul %502, %503, %cst_110 {dimension_numbers = #tpu.dot_dimension_numbers<[1], [0], [0], [1], [0, 0, 1, 1], [], []>} : vector<2x32xf32>, vector<32x1xf32>, vector<2x1xf32> -> vector<2x1xf32>
    %c0_111 = arith.constant 0 : index
    %c0_112 = arith.constant 0 : index
    %505 = vector.load %arg8[%c0_111, %c0_112] : memref<1x1xf32, #tpu.memory_space<vmem>>, vector<1x1xf32>
    %506 = vector.broadcast %505 : vector<1x1xf32> to vector<2x1xf32>
    %507 = arith.addf %504, %506 : vector<2x1xf32>
    %c0_113 = arith.constant 0 : index
    %c0_114 = arith.constant 0 : index
    %508 = vector.load %arg9[%c0_113, %c0_114] : memref<2x1xf32, #tpu.memory_space<vmem>>, vector<2x1xf32>
    tpu.vector_store %arg9[%c0_113, %c0_114], %507 {strides = array<i32>} : memref<2x1xf32, #tpu.memory_space<vmem>>, vector<2x1xf32>,
    return
  }
}

</mosaic_0001>

<bundles_post_ra>
// kernel: tpu_custom_call.1
= control target key start
LH: loop header
LB: loop body
LE: loop exit
PB: predicated region body
PF: predicated region fallthrough
CT: control target
= control target key end

     0   :  { %s4309_s0 = inlined_call_operand.vmem [shape: f32[8,2,6], index: 0, kind: input, shape index: {}]   ;;  %s4310_s1 = inlined_call_operand.hbm [shape: f32[6,128], index: 1, kind: input, shape index: {}]   ;;  %s4311_s2 = inlined_call_operand.vmem [shape: f32[32,128], index: 2, kind: input, shape index: {}]   ;;  %s4312_s3 = inlined_call_operand.vmem [shape: f32[1,128], index: 3, kind: input, shape index: {}]   ;;  %s4313_s4 = inlined_call_operand.vmem [shape: f32[32,128], index: 4, kind: input, shape index: {}]   ;;  %s4314_s5 = inlined_call_operand.hbm [shape: f32[32,128], index: 5, kind: input, shape index: {}]   ;;  %s4315_s6 = inlined_call_operand.vmem [shape: f32[1,128], index: 6, kind: input, shape index: {}]   ;;  %s4316_s7 = inlined_call_operand.vmem [shape: f32[32,1], index: 7, kind: input, shape index: {}]   ;;  %s4317_s8 = inlined_call_operand.<no memory space> [shape: f32[1,1], index: 8, kind: input, shape index: {}]   ;;  %s4318_s9 = inlined_call_operand.vmem [shape: f32[2,1], index: 9, kind: output, shape index: {}]  }
   0x1   :  { %v14_v0 = vstv %s4317_s8 }
   0x2   :  { %15 = vst [vmem:[#allocation2] sm:$0x1] %v14_v0 }
   0x3   :  { %16 = vsyncpa [#allocation4], 0 }
   0x4   :  { %17 = vsyncpa [#allocation6], 0  ;;  %s3660_s11 = smov [#allocation3]   ;;  %s3661_s13 = smov [#allocation5]  }
   0x5   :  { %s26_s12 = sshll.u32 %s3660_s11, 4  ;;  %s41_s14 = sshll.u32 %s3661_s13, 4  ;;  %s27_s12 = int_to_ptr.vmem [resolvable:$true] %s26_s12  ;;  %s42_s14 = int_to_ptr.vmem [resolvable:$true] %s41_s14 }
   0x6   :  { %s3624_s15 = scalar_lea.vmem %s27_s12, 128  ;;  %p3629_p1 = scmp.lt.s32.totalorder %s27_s12, %s27_s12 }
   0x7   :  { %p3625_p0 = scmp.ne.s32.totalorder %s27_s12, %s3624_s15  ;;  %p3630_p2 = scmp.lt.s32.totalorder %s3624_s15, %s3624_s15 }
   0x9   :  { %p3631_p3 = por %p3630_p2, %p3629_p1 }
   0xb   :  { %p3632_p4 = pnand %p3631_p3, %p3625_p0 }
   0xd   :  { %3635 = shalt.err (!%p3632_p4)
}
   0xe   :  { %29 = dma.hbm_to_vmem [thread:$0]  %s4310_s1, 128, %s27_s12, [#allocation4]  }
   0xf   :  { %s3644_s8 = scalar_lea.vmem %s42_s14, 512  ;;  %p3649_p6 = scmp.lt.s32.totalorder %s42_s14, %s42_s14 }
  0x10   :  { %p3645_p5 = scmp.ne.s32.totalorder %s42_s14, %s3644_s8  ;;  %p3650_p7 = scmp.lt.s32.totalorder %s3644_s8, %s3644_s8 }
  0x12   :  { %p3651_p8 = por %p3650_p7, %p3649_p6 }
  0x14   :  { %p3652_p9 = pnand %p3651_p8, %p3645_p5 }
  0x16   :  { %3655 = shalt.err (!%p3652_p9)
}
  0x17   :  { %s3662_s18 = smov 128   ;;  %s3663_s19 = smov 8  }
  0x18   :  { %47 = dma.hbm_to_vmem [thread:$0]  %s4314_s5, 512, %s42_s14, [#allocation6], %s3662_s18, %s3662_s18, %s3663_s19  }
  0x19   :  { %3656 = dma.done.wait [#allocation4], 128  }
  0x1a   :  { %3657 = vsyncadd [#allocation4], 4294967168 }
  0x1b   :  { %3658 = dma.done.wait [#allocation6], 512  }
  0x1c   :  { %3659 = vsyncadd [#allocation6], 4294966784  ;;  %v3664_v1 = vmov 0.0   ;;  %vm3665_vm0 = vmmov 0   ;;  %v3736_v2 = vld [vmem:[%s4311_s2 + $0x18] sm:$0xff]  ;;  %v3741_v3 = vld [vmem:[%s4311_s2 + $0x10] sm:$0xff] }
  0x1d   :  { %3150 = vmatprep.subr.mxu0 %v3664_v1  ;;  %3158 = vmatprep.mubr.msk.f32.mxu0 %vm3665_vm0, %v3664_v1  ;;  %v3748_v4 = vld [vmem:[%s4311_s2 + $0x8] sm:$0xff]  ;;  %v3755_v5 = vld [vmem:[%s4311_s2] sm:$0xff]  ;;  %vm154_vm1 = vcmask 1045504   ;;  %vm150_vm2 = vcmask 48128   ;;  %s3666_s11 = smov 64   ;;  %s3667_s12 = smov 32  }
  0x1e   :  { %3166 = vmatprep.subr.mxu1 %v3664_v1  ;;  %3174 = vmatprep.mubr.msk.f32.mxu1 %vm3665_vm0, %v3664_v1  ;;  %v3759_v6 = vld [vmem:[#allocation3] sm:$0x3f]  ;;  %v3778_v10 = vld [vmem:[%s4312_s3] ss:$0 sm:$0xff]  ;;  %v3794_v27 = vld [vmem:[%s4313_s4 + $0x18] sm:$0xff]  ;;  %vm76_vm3 = vcmask 261120  }
  0x1f   :  { %3151 = vmatpush3.msra.mxu0 %v3736_v2  ;;  %v75_v7 = vld [vmem:[%s4309_s0] sm:$0x3]  ;;  %v3799_v28 = vld [vmem:[%s4313_s4 + $0x10] sm:$0xff]  ;;  %v3810_v30 = vld [vmem:[%s4313_s4 + $0x8] sm:$0xff]  ;;  %vm2936_vm4 = vcmask 1024  }
  0x20   :  { %3152 = vmatprep.subr.mxu0 %v3664_v1  ;;  %v3786_v25 = vld [vmem:[#allocation5 + $0x18] sm:$0xff]  ;;  %v3788_v26 = vld [vmem:[#allocation5 + $0x10] sm:$0xff]  ;;  %v3802_v29 = vld [vmem:[#allocation5 + $0x8] sm:$0xff] }
  0x21   :  { %3153 = vmatpush3.msra.mxu0 %v3741_v3  ;;  %3167 = vmatpush3.msra.mxu1 %v3786_v25  ;;  %v3813_v31 = vld [vmem:[#allocation5] sm:$0xff]  ;;  %v3823_v32 = vld [vmem:[%s4313_s4] sm:$0xff] }
  0x22   :  { %3154 = vmatprep.subr.mxu0 %v3664_v1  ;;  %3168 = vmatprep.subr.mxu1 %v3664_v1  ;;  %v2951_v39 = vld [vmem:[%s4309_s0 + $0x2] sm:$0x3]  ;;  %v3877_v40 = vld [vmem:[%s4315_s6] ss:$0 sm:$0xff] }
  0x23   :  { %3155 = vmatpush3.msra.mxu0 %v3748_v4  ;;  %3169 = vmatpush3.msra.mxu1 %v3788_v26 }
  0x24   :  { %3156 = vmatprep.subr.mxu0 %v3664_v1  ;;  %3170 = vmatprep.subr.mxu1 %v3664_v1 }
  0x25   :  { %3157 = vmatpush3.msra.mxu0 %v3755_v5  ;;  %3171 = vmatpush3.msra.mxu1 %v3802_v29 }
  0x26   :  { %3159 = vmatmul.mubr.f32.vlgmr.msra.gmra.mxu0 %v3664_v1  ;;  %3161 = vmatprep.subr.mxu0 %v3664_v1 }
  0x27   :  { %3162 = vmatpush3.msk.msra.mxu0 %vm154_vm1, %v3759_v6  ;;  %3163 = vmatprep.mubr.msk.f32.mxu0 %vm3665_vm0, %v3664_v1 }
  0x28   :  { %3177 = vmatprep.subr.mxu0 %v3664_v1  ;;  %3172 = vmatprep.subr.mxu1 %v3664_v1 }
  0x29   :  { %3173 = vmatpush3.msra.mxu1 %v3813_v31 }
  0x2a   :  { %3164 = vmatmul.mubr.msk.f32.vlgmr.msra.gmra.mxu0 %vm150_vm2, %v75_v7  ;;  %3188 = vmatprep.subr.mxu1 %v3664_v1 }
  0x2b   :  { %3185 = vmatprep.mubr.msk.f32.mxu0 %vm3665_vm0, %v3664_v1  ;;  %3178 = vmatpush3.msra.mxu0 %v3794_v27 }
  0x2c   :  { %3179 = vmatprep.subr.mxu0 %v3664_v1  ;;  %3175 = vmatmul.mubr.f32.vlgmr.msra.gmra.mxu1 %v3664_v1 }
  0x2d   :  { %3180 = vmatpush3.msra.mxu0 %v3799_v28  ;;  %3189 = vmatpush3.msra.mxu1 %v3736_v2 }
  0x2e   :  { %3181 = vmatprep.subr.mxu0 %v3664_v1  ;;  %3190 = vmatprep.subr.mxu1 %v3664_v1 }
  0x2f   :  { %3182 = vmatpush3.msra.mxu0 %v3810_v30  ;;  %3196 = vmatprep.mubr.msk.f32.mxu1 %vm3665_vm0, %v3664_v1 }
  0x30   :  { %3183 = vmatprep.subr.mxu0 %v3664_v1  ;;  %3191 = vmatpush3.msra.mxu1 %v3741_v3 }
  0x31   :  { %3184 = vmatpush3.msra.mxu0 %v3823_v32  ;;  %3192 = vmatprep.subr.mxu1 %v3664_v1 }
  0x32   :  { %3199 = vmatprep.subr.mxu0 %v3664_v1  ;;  %3193 = vmatpush3.msra.mxu1 %v3748_v4 }
  0x33   :  { %3194 = vmatprep.subr.mxu1 %v3664_v1 }
  0x34   :  { %3195 = vmatpush3.msra.mxu1 %v3755_v5 }
  0x35   :  { %3204 = vmatprep.subr.mxu1 %v3664_v1 }
  0xe6   :  { %v146_v8 = vpop.f32.mrf.mxu0 }
  0xe8   :  { %v3160_v9 = vpop.f32.mrf.mxu0 }
  0xea   :  { %v224_v11 = vpop.f32.mrf.mxu0 }
  0xeb   :  { %v225_v12 = vadd.f32 %v224_v11, %v146_v8 }
  0xec   :  { %v3165_v13 = vpop.f32.mrf.mxu0  ;;  %v325_v36 = vpop.f32.mrf.mxu1 }
  0xed   :  { %v234_v14 = vadd.f32 %v3778_v10, %v225_v12 }
  0xee   :  { %v3176_v37 = vpop.f32.mrf.mxu1 }
  0xef   :  { %3473 = vtanh.f32 %v234_v14  ;;  %v2947_v16 = vmul.f32 -1.442695, %v234_v14 }
  0xf1   :  { %3475 = vpow2.f32 %v2947_v16 }
  0xfc   :  { %v3474_v15 = vpop.eup %3473 }
  0xfd   :  { %244 = vrot.lane.b32.xlu0 %v3474_v15, %s3666_s11 }
  0xfe   :  { %v3476_v17 = vpop.eup %3475 }
  0xff   :  { %v238_v18 = vadd.f32 1.0, %v3476_v17 }
 0x101   :  { %3477 = vrcp.f32 %v238_v18 }
 0x10e   :  { %v3478_v19 = vpop.eup %3477 }
 0x10f   :  { %v242_v22 = vmul.f32 0.0, %v3478_v19 }
 0x16f   :  { %v245_v20 = vpop.permute.xlu0 %244 }
 0x170   :  { %v247_v21 = vmul.f32 %v3478_v19, %v245_v20 }
 0x172   :  { %249 = vrot.lane.b32.xlu0 %v247_v21, %s3667_s12 }
 0x1e4   :  { %v250_v23 = vpop.permute.xlu0 %249 }
 0x1e5   :  { %v3783_v24 = vadd.f32 %v250_v23, %v242_v22  ;;  %v2959_v22 = vld [vmem:[%s4309_s0 + $0x4] sm:$0x3] }
 0x1e7   :  { %3479 = vtanh.f32 %v3783_v24 }
 0x1f4   :  { %v3480_v33 = vpop.eup %3479 }
 0x1f5   :  { %255 = vrot.lane.b32.xlu1 %v3480_v33, %s3666_s11 }
 0x267   :  { %v256_v34 = vpop.permute.xlu1 %255 }
 0x268   :  { %v258_v35 = vmul.f32 %v3478_v19, %v256_v34 }
 0x26a   :  { %330 = vrot.lane.b32.xlu1 %v258_v35, %s3667_s12 }
 0x2dc   :  { %v331_v38 = vpop.permute.xlu1 %330 }
 0x2dd   :  { %3186 = vmatmul.mubr.msk.f32.vlgmr.msra.gmra.mxu0 %vm76_vm3, %v331_v38  ;;  %3197 = vmatmul.mubr.msk.f32.vlgmr.msra.gmra.mxu1 %vm76_vm3, %v331_v38 }
 0x2de   :  { %3200 = vmatpush3.msk.msra.mxu0 %vm154_vm1, %v3759_v6  ;;  %3201 = vmatprep.mubr.msk.f32.mxu0 %vm3665_vm0, %v3664_v1 }
 0x2df   :  { %3205 = vmatpush3.msra.mxu1 %v3786_v25  ;;  %3215 = vmatprep.subr.mxu0 %v3664_v1 }
 0x2e0   :  { %3206 = vmatprep.subr.mxu1 %v3664_v1  ;;  %3212 = vmatprep.mubr.msk.f32.mxu1 %vm3665_vm0, %v3664_v1 }
 0x2e1   :  { %3202 = vmatmul.mubr.msk.f32.vlgmr.msra.gmra.mxu0 %vm150_vm2, %v2951_v39  ;;  %3207 = vmatpush3.msra.mxu1 %v3788_v26 }
 0x2e2   :  { %3208 = vmatprep.subr.mxu1 %v3664_v1  ;;  %3216 = vmatpush3.msra.mxu0 %v3794_v27 }
 0x2e3   :  { %3209 = vmatpush3.msra.mxu1 %v3802_v29  ;;  %3217 = vmatprep.subr.mxu0 %v3664_v1 }
 0x2e4   :  { %3210 = vmatprep.subr.mxu1 %v3664_v1  ;;  %3218 = vmatpush3.msra.mxu0 %v3799_v28 }
 0x2e5   :  { %3211 = vmatpush3.msra.mxu1 %v3813_v31  ;;  %3219 = vmatprep.subr.mxu0 %v3664_v1 }
 0x2e6   :  { %3226 = vmatprep.subr.mxu1 %v3664_v1  ;;  %3220 = vmatpush3.msra.mxu0 %v3810_v30 }
 0x2e7   :  { %3221 = vmatprep.subr.mxu0 %v3664_v1  ;;  %3223 = vmatprep.mubr.msk.f32.mxu0 %vm3665_vm0, %v3664_v1 }
 0x2e8   :  { %3222 = vmatpush3.msra.mxu0 %v3823_v32 }
 0x2e9   :  { %3237 = vmatprep.subr.mxu0 %v3664_v1 }
 0x39d   :  { %v400_v41 = vpop.f32.mrf.mxu0  ;;  %v503_v42 = vpop.f32.mrf.mxu1 }
 0x39e   :  { %v401_v43 = vadd.f32 %v400_v41, %v325_v36 }
 0x39f   :  { %v3187_v44 = vpop.f32.mrf.mxu0  ;;  %v3198_v45 = vpop.f32.mrf.mxu1 }
 0x3a0   :  { %v410_v46 = vadd.f32 %v3877_v40, %v401_v43 }
 0x3a1   :  { %v576_v47 = vpop.f32.mrf.mxu0 }
 0x3a2   :  { %3481 = vtanh.f32 %v410_v46  ;;  %v577_v48 = vadd.f32 %v576_v47, %v503_v42  ;;  %v2950_v53 = vmul.f32 -1.442695, %v410_v46 }
 0x3a3   :  { %v3203_v49 = vpop.f32.mrf.mxu0 }
 0x3a4   :  { %v580_v50 = vadd.f32 %v3778_v10, %v577_v48 }
 0x3a6   :  { %3483 = vtanh.f32 %v580_v50  ;;  %v2955_v54 = vmul.f32 -1.442695, %v580_v50 }
 0x3a7   :  { %3485 = vpow2.f32 %v2950_v53 }
 0x3a8   :  { %3487 = vpow2.f32 %v2955_v54 }
 0x3af   :  { %v3482_v51 = vpop.eup %3481 }
 0x3b0   :  { %420 = vrot.lane.b32.xlu0 %v3482_v51, %s3666_s11 }
 0x3b3   :  { %v3484_v52 = vpop.eup %3483 }
 0x3b4   :  { %590 = vrot.lane.b32.xlu1 %v3484_v52, %s3666_s11  ;;  %v3486_v55 = vpop.eup %3485 }
 0x3b5   :  { %v414_v56 = vadd.f32 1.0, %v3486_v55  ;;  %v3488_v57 = vpop.eup %3487 }
 0x3b6   :  { %v584_v58 = vadd.f32 1.0, %v3488_v57 }
 0x3b7   :  { %3489 = vrcp.f32 %v414_v56 }
 0x3b8   :  { %3491 = vrcp.f32 %v584_v58 }
 0x3c4   :  { %v3490_v59 = vpop.eup %3489 }
 0x3c5   :  { %v3492_v62 = vpop.eup %3491  ;;  %v418_v7 = vmul.f32 0.0, %v3490_v59 }
 0x3c6   :  { %v588_v11 = vmul.f32 %v3492_v62, %v3783_v24 }
 0x422   :  { %v421_v60 = vpop.permute.xlu0 %420 }
 0x423   :  { %v423_v61 = vmul.f32 %v3490_v59, %v421_v60 }
 0x425   :  { %425 = vrot.lane.b32.xlu0 %v423_v61, %s3667_s12 }
 0x426   :  { %v591_v63 = vpop.permute.xlu1 %590 }
 0x427   :  { %v593_v0 = vmul.f32 %v3492_v62, %v591_v63 }
 0x429   :  { %595 = vrot.lane.b32.xlu1 %v593_v0, %s3667_s12 }
 0x497   :  { %v426_v8 = vpop.permute.xlu0 %425 }
 0x498   :  { %v3885_v9 = vadd.f32 %v426_v8, %v418_v7 }
 0x49a   :  { %3493 = vtanh.f32 %v3885_v9 }
 0x49b   :  { %v596_v12 = vpop.permute.xlu1 %595 }
 0x49c   :  { %v3889_v13 = vadd.f32 %v596_v12, %v588_v11 }
 0x49e   :  { %3495 = vtanh.f32 %v3889_v13 }
 0x4a7   :  { %v3494_v14 = vpop.eup %3493 }
 0x4a8   :  { %431 = vrot.lane.b32.xlu0 %v3494_v14, %s3666_s11 }
 0x4ab   :  { %v3496_v15 = vpop.eup %3495 }
 0x4ac   :  { %601 = vrot.lane.b32.xlu1 %v3496_v15, %s3666_s11  ;;  %v2967_v15 = vld [vmem:[%s4309_s0 + $0x6] sm:$0x3] }
 0x51a   :  { %v432_v16 = vpop.permute.xlu0 %431 }
 0x51b   :  { %v434_v17 = vmul.f32 %v3490_v59, %v432_v16 }
 0x51d   :  { %606 = vrot.lane.b32.xlu0 %v434_v17, %s3667_s12 }
 0x51e   :  { %v602_v18 = vpop.permute.xlu1 %601 }
 0x51f   :  { %v604_v19 = vmul.f32 %v3492_v62, %v602_v18 }
 0x521   :  { %681 = vrot.lane.b32.xlu1 %v604_v19, %s3667_s12 }
 0x58f   :  { %v607_v20 = vpop.permute.xlu0 %606 }
 0x590   :  { %3213 = vmatmul.mubr.msk.f32.vlgmr.msra.gmra.mxu1 %vm76_vm3, %v607_v20 }
 0x591   :  { %3227 = vmatpush3.msra.mxu1 %v3736_v2  ;;  %3234 = vmatprep.mubr.msk.f32.mxu1 %vm3665_vm0, %v3664_v1 }
 0x592   :  { %3228 = vmatprep.subr.mxu1 %v3664_v1 }
 0x593   :  { %3229 = vmatpush3.msra.mxu1 %v3741_v3  ;;  %v682_v21 = vpop.permute.xlu1 %681 }
 0x594   :  { %3230 = vmatprep.subr.mxu1 %v3664_v1  ;;  %3224 = vmatmul.mubr.msk.f32.vlgmr.msra.gmra.mxu0 %vm76_vm3, %v682_v21 }
 0x595   :  { %3231 = vmatpush3.msra.mxu1 %v3748_v4  ;;  %3238 = vmatpush3.msk.msra.mxu0 %vm154_vm1, %v3759_v6 }
 0x596   :  { %3232 = vmatprep.subr.mxu1 %v3664_v1  ;;  %3239 = vmatprep.mubr.msk.f32.mxu0 %vm3665_vm0, %v3664_v1 }
 0x597   :  { %3233 = vmatpush3.msra.mxu1 %v3755_v5  ;;  %3242 = vmatprep.subr.mxu0 %v3664_v1 }
 0x598   :  { %3235 = vmatmul.mubr.msk.f32.vlgmr.msra.gmra.mxu1 %vm76_vm3, %v682_v21  ;;  %3240 = vmatmul.mubr.msk.f32.vlgmr.msra.gmra.mxu0 %vm150_vm2, %v2959_v22 }
 0x599   :  { %3243 = vmatpush3.msra.mxu0 %v3786_v25  ;;  %3253 = vmatprep.subr.mxu1 %v3664_v1 }
 0x59a   :  { %3244 = vmatprep.subr.mxu0 %v3664_v1  ;;  %3254 = vmatpush3.msra.mxu1 %v3794_v27 }
 0x59b   :  { %3245 = vmatpush3.msra.mxu0 %v3788_v26  ;;  %3255 = vmatprep.subr.mxu1 %v3664_v1 }
 0x59c   :  { %3246 = vmatprep.subr.mxu0 %v3664_v1  ;;  %3250 = vmatprep.mubr.msk.f32.mxu0 %vm3665_vm0, %v3664_v1 }
 0x59d   :  { %3247 = vmatpush3.msra.mxu0 %v3802_v29  ;;  %3256 = vmatpush3.msra.mxu1 %v3799_v28 }
 0x59e   :  { %3248 = vmatprep.subr.mxu0 %v3664_v1  ;;  %3257 = vmatprep.subr.mxu1 %v3664_v1 }
 0x59f   :  { %3249 = vmatpush3.msra.mxu0 %v3813_v31  ;;  %3258 = vmatpush3.msra.mxu1 %v3810_v30 }
 0x5a0   :  { %3264 = vmatprep.subr.mxu0 %v3664_v1  ;;  %3259 = vmatprep.subr.mxu1 %v3664_v1 }
 0x5a1   :  { %3260 = vmatpush3.msra.mxu1 %v3823_v32  ;;  %3261 = vmatprep.mubr.msk.f32.mxu1 %vm3665_vm0, %v3664_v1 }
 0x5a2   :  { %3275 = vmatprep.subr.mxu1 %v3664_v1 }
 0x650   :  { %v676_v23 = vpop.f32.mrf.mxu1 }
 0x652   :  { %v3214_v24 = vpop.f32.mrf.mxu1 }
 0x654   :  { %v751_v33 = vpop.f32.mrf.mxu0 }
 0x655   :  { %v752_v34 = vadd.f32 %v751_v33, %v676_v23 }
 0x656   :  { %v3225_v35 = vpop.f32.mrf.mxu0 }
 0x657   :  { %v755_v36 = vadd.f32 %v3877_v40, %v752_v34 }
 0x658   :  { %v848_v37 = vpop.f32.mrf.mxu1  ;;  %v921_v38 = vpop.f32.mrf.mxu0 }
 0x659   :  { %3497 = vtanh.f32 %v755_v36  ;;  %v922_v39 = vadd.f32 %v921_v38, %v848_v37  ;;  %v2958_v46 = vmul.f32 -1.442695, %v755_v36 }
 0x65a   :  { %v3236_v41 = vpop.f32.mrf.mxu1  ;;  %v3241_v42 = vpop.f32.mrf.mxu0 }
 0x65b   :  { %v925_v43 = vadd.f32 %v3778_v10, %v922_v39 }
 0x65d   :  { %3499 = vtanh.f32 %v925_v43  ;;  %v2963_v47 = vmul.f32 -1.442695, %v925_v43 }
 0x65e   :  { %3501 = vpow2.f32 %v2958_v46 }
 0x65f   :  { %3503 = vpow2.f32 %v2963_v47 }
 0x666   :  { %v3498_v44 = vpop.eup %3497 }
 0x667   :  { %765 = vrot.lane.b32.xlu0 %v3498_v44, %s3666_s11 }
 0x66a   :  { %v3500_v45 = vpop.eup %3499 }
 0x66b   :  { %935 = vrot.lane.b32.xlu1 %v3500_v45, %s3666_s11  ;;  %v3502_v48 = vpop.eup %3501 }
 0x66c   :  { %v759_v49 = vadd.f32 1.0, %v3502_v48  ;;  %v3504_v50 = vpop.eup %3503 }
 0x66d   :  { %v929_v51 = vadd.f32 1.0, %v3504_v50 }
 0x66e   :  { %3505 = vrcp.f32 %v759_v49 }
 0x66f   :  { %3507 = vrcp.f32 %v929_v51 }
 0x67b   :  { %v3506_v52 = vpop.eup %3505 }
 0x67c   :  { %v3508_v55 = vpop.eup %3507  ;;  %v763_v58 = vmul.f32 %v3506_v52, %v3885_v9 }
 0x67d   :  { %v933_v61 = vmul.f32 %v3508_v55, %v3889_v13 }
 0x6d9   :  { %v766_v53 = vpop.permute.xlu0 %765 }
 0x6da   :  { %v768_v54 = vmul.f32 %v3506_v52, %v766_v53 }
 0x6dc   :  { %770 = vrot.lane.b32.xlu0 %v768_v54, %s3667_s12 }
 0x6dd   :  { %v936_v56 = vpop.permute.xlu1 %935 }
 0x6de   :  { %v938_v57 = vmul.f32 %v3508_v55, %v936_v56 }
 0x6e0   :  { %940 = vrot.lane.b32.xlu1 %v938_v57, %s3667_s12 }
 0x74e   :  { %v771_v59 = vpop.permute.xlu0 %770 }
 0x74f   :  { %v3945_v60 = vadd.f32 %v771_v59, %v763_v58 }
 0x751   :  { %3509 = vtanh.f32 %v3945_v60 }
 0x752   :  { %v941_v62 = vpop.permute.xlu1 %940 }
 0x753   :  { %v3949_v63 = vadd.f32 %v941_v62, %v933_v61 }
 0x755   :  { %3511 = vtanh.f32 %v3949_v63 }
 0x75e   :  { %v3510_v0 = vpop.eup %3509 }
 0x75f   :  { %776 = vrot.lane.b32.xlu0 %v3510_v0, %s3666_s11 }
 0x762   :  { %v3512_v7 = vpop.eup %3511 }
 0x763   :  { %946 = vrot.lane.b32.xlu1 %v3512_v7, %s3666_s11  ;;  %v2975_v7 = vld [vmem:[%s4309_s0 + $0x8] sm:$0x3] }
 0x7d1   :  { %v777_v8 = vpop.permute.xlu0 %776 }
 0x7d2   :  { %v779_v9 = vmul.f32 %v3506_v52, %v777_v8 }
 0x7d4   :  { %951 = vrot.lane.b32.xlu0 %v779_v9, %s3667_s12 }
 0x7d5   :  { %v947_v11 = vpop.permute.xlu1 %946 }
 0x7d6   :  { %v949_v12 = vmul.f32 %v3508_v55, %v947_v11 }
 0x7d8   :  { %1026 = vrot.lane.b32.xlu1 %v949_v12, %s3667_s12 }
 0x846   :  { %v952_v13 = vpop.permute.xlu0 %951 }
 0x847   :  { %3251 = vmatmul.mubr.msk.f32.vlgmr.msra.gmra.mxu0 %vm76_vm3, %v952_v13 }
 0x848   :  { %3265 = vmatpush3.msra.mxu0 %v3736_v2  ;;  %3272 = vmatprep.mubr.msk.f32.mxu0 %vm3665_vm0, %v3664_v1 }
 0x849   :  { %3266 = vmatprep.subr.mxu0 %v3664_v1 }
 0x84a   :  { %3267 = vmatpush3.msra.mxu0 %v3741_v3  ;;  %v1027_v14 = vpop.permute.xlu1 %1026 }
 0x84b   :  { %3268 = vmatprep.subr.mxu0 %v3664_v1  ;;  %3262 = vmatmul.mubr.msk.f32.vlgmr.msra.gmra.mxu1 %vm76_vm3, %v1027_v14 }
 0x84c   :  { %3269 = vmatpush3.msra.mxu0 %v3748_v4  ;;  %3276 = vmatpush3.msk.msra.mxu1 %vm154_vm1, %v3759_v6 }
 0x84d   :  { %3270 = vmatprep.subr.mxu0 %v3664_v1  ;;  %3277 = vmatprep.mubr.msk.f32.mxu1 %vm3665_vm0, %v3664_v1 }
 0x84e   :  { %3271 = vmatpush3.msra.mxu0 %v3755_v5  ;;  %3280 = vmatprep.subr.mxu1 %v3664_v1 }
 0x84f   :  { %3273 = vmatmul.mubr.msk.f32.vlgmr.msra.gmra.mxu0 %vm76_vm3, %v1027_v14  ;;  %3278 = vmatmul.mubr.msk.f32.vlgmr.msra.gmra.mxu1 %vm150_vm2, %v2967_v15 }
 0x850   :  { %3281 = vmatpush3.msra.mxu1 %v3786_v25  ;;  %3291 = vmatprep.subr.mxu0 %v3664_v1 }
 0x851   :  { %3282 = vmatprep.subr.mxu1 %v3664_v1  ;;  %3292 = vmatpush3.msra.mxu0 %v3794_v27 }
 0x852   :  { %3283 = vmatpush3.msra.mxu1 %v3788_v26  ;;  %3293 = vmatprep.subr.mxu0 %v3664_v1 }
 0x853   :  { %3284 = vmatprep.subr.mxu1 %v3664_v1  ;;  %3288 = vmatprep.mubr.msk.f32.mxu1 %vm3665_vm0, %v3664_v1 }
 0x854   :  { %3285 = vmatpush3.msra.mxu1 %v3802_v29  ;;  %3294 = vmatpush3.msra.mxu0 %v3799_v28 }
 0x855   :  { %3286 = vmatprep.subr.mxu1 %v3664_v1  ;;  %3295 = vmatprep.subr.mxu0 %v3664_v1 }
 0x856   :  { %3287 = vmatpush3.msra.mxu1 %v3813_v31  ;;  %3296 = vmatpush3.msra.mxu0 %v3810_v30 }
 0x857   :  { %3302 = vmatprep.subr.mxu1 %v3664_v1  ;;  %3297 = vmatprep.subr.mxu0 %v3664_v1 }
 0x858   :  { %3298 = vmatpush3.msra.mxu0 %v3823_v32  ;;  %3299 = vmatprep.mubr.msk.f32.mxu0 %vm3665_vm0, %v3664_v1 }
 0x859   :  { %3313 = vmatprep.subr.mxu0 %v3664_v1 }
 0x907   :  { %v1021_v16 = vpop.f32.mrf.mxu0 }
 0x909   :  { %v3252_v17 = vpop.f32.mrf.mxu0 }
 0x90b   :  { %v1096_v18 = vpop.f32.mrf.mxu1 }
 0x90c   :  { %v1097_v19 = vadd.f32 %v1096_v18, %v1021_v16 }
 0x90d   :  { %v3263_v20 = vpop.f32.mrf.mxu1 }
 0x90e   :  { %v1100_v21 = vadd.f32 %v3877_v40, %v1097_v19 }
 0x90f   :  { %v1193_v22 = vpop.f32.mrf.mxu0  ;;  %v1266_v23 = vpop.f32.mrf.mxu1 }
 0x910   :  { %3513 = vtanh.f32 %v1100_v21  ;;  %v1267_v24 = vadd.f32 %v1266_v23, %v1193_v22  ;;  %v2966_v38 = vmul.f32 -1.442695, %v1100_v21 }
 0x911   :  { %v3274_v33 = vpop.f32.mrf.mxu0  ;;  %v3279_v34 = vpop.f32.mrf.mxu1 }
 0x912   :  { %v1270_v35 = vadd.f32 %v3778_v10, %v1267_v24 }
 0x914   :  { %3515 = vtanh.f32 %v1270_v35  ;;  %v2971_v39 = vmul.f32 -1.442695, %v1270_v35 }
 0x915   :  { %3517 = vpow2.f32 %v2966_v38 }
 0x916   :  { %3519 = vpow2.f32 %v2971_v39 }
 0x91d   :  { %v3514_v36 = vpop.eup %3513 }
 0x91e   :  { %1110 = vrot.lane.b32.xlu0 %v3514_v36, %s3666_s11 }
 0x921   :  { %v3516_v37 = vpop.eup %3515 }
 0x922   :  { %1280 = vrot.lane.b32.xlu1 %v3516_v37, %s3666_s11  ;;  %v3518_v41 = vpop.eup %3517 }
 0x923   :  { %v1104_v42 = vadd.f32 1.0, %v3518_v41  ;;  %v3520_v43 = vpop.eup %3519 }
 0x924   :  { %v1274_v44 = vadd.f32 1.0, %v3520_v43 }
 0x925   :  { %3521 = vrcp.f32 %v1104_v42 }
 0x926   :  { %3523 = vrcp.f32 %v1274_v44 }
 0x932   :  { %v3522_v45 = vpop.eup %3521 }
 0x933   :  { %v3524_v48 = vpop.eup %3523  ;;  %v1108_v51 = vmul.f32 %v3522_v45, %v3945_v60 }
 0x934   :  { %v1278_v54 = vmul.f32 %v3524_v48, %v3949_v63 }
 0x990   :  { %v1111_v46 = vpop.permute.xlu0 %1110 }
 0x991   :  { %v1113_v47 = vmul.f32 %v3522_v45, %v1111_v46 }
 0x993   :  { %1115 = vrot.lane.b32.xlu0 %v1113_v47, %s3667_s12 }
 0x994   :  { %v1281_v49 = vpop.permute.xlu1 %1280 }
 0x995   :  { %v1283_v50 = vmul.f32 %v3524_v48, %v1281_v49 }
 0x997   :  { %1285 = vrot.lane.b32.xlu1 %v1283_v50, %s3667_s12 }
 0xa05   :  { %v1116_v52 = vpop.permute.xlu0 %1115 }
 0xa06   :  { %v4005_v53 = vadd.f32 %v1116_v52, %v1108_v51 }
 0xa08   :  { %3525 = vtanh.f32 %v4005_v53 }
 0xa09   :  { %v1286_v55 = vpop.permute.xlu1 %1285 }
 0xa0a   :  { %v4009_v56 = vadd.f32 %v1286_v55, %v1278_v54 }
 0xa0c   :  { %3527 = vtanh.f32 %v4009_v56 }
 0xa15   :  { %v3526_v57 = vpop.eup %3525 }
 0xa16   :  { %1121 = vrot.lane.b32.xlu0 %v3526_v57, %s3666_s11 }
 0xa19   :  { %v3528_v58 = vpop.eup %3527 }
 0xa1a   :  { %1291 = vrot.lane.b32.xlu1 %v3528_v58, %s3666_s11 }
 0xa88   :  { %v1122_v59 = vpop.permute.xlu0 %1121 }
 0xa89   :  { %v1124_v60 = vmul.f32 %v3522_v45, %v1122_v59 }
 0xa8b   :  { %1296 = vrot.lane.b32.xlu0 %v1124_v60, %s3667_s12 }
 0xa8c   :  { %v1292_v61 = vpop.permute.xlu1 %1291 }
 0xa8d   :  { %v1294_v62 = vmul.f32 %v3524_v48, %v1292_v61 }
 0xa8f   :  { %1371 = vrot.lane.b32.xlu1 %v1294_v62, %s3667_s12 }
 0xafd   :  { %v1297_v63 = vpop.permute.xlu0 %1296 }
 0xafe   :  { %3289 = vmatmul.mubr.msk.f32.vlgmr.msra.gmra.mxu1 %vm76_vm3, %v1297_v63 }
 0xaff   :  { %3303 = vmatpush3.msra.mxu1 %v3736_v2  ;;  %3310 = vmatprep.mubr.msk.f32.mxu1 %vm3665_vm0, %v3664_v1 }
 0xb00   :  { %3304 = vmatprep.subr.mxu1 %v3664_v1 }
 0xb01   :  { %3305 = vmatpush3.msra.mxu1 %v3741_v3  ;;  %v1372_v0 = vpop.permute.xlu1 %1371 }
 0xb02   :  { %3306 = vmatprep.subr.mxu1 %v3664_v1  ;;  %3300 = vmatmul.mubr.msk.f32.vlgmr.msra.gmra.mxu0 %vm76_vm3, %v1372_v0 }
 0xb03   :  { %3307 = vmatpush3.msra.mxu1 %v3748_v4  ;;  %3314 = vmatpush3.msk.msra.mxu0 %vm154_vm1, %v3759_v6 }
 0xb04   :  { %3308 = vmatprep.subr.mxu1 %v3664_v1  ;;  %3315 = vmatprep.mubr.msk.f32.mxu0 %vm3665_vm0, %v3664_v1 }
 0xb05   :  { %3309 = vmatpush3.msra.mxu1 %v3755_v5  ;;  %3318 = vmatprep.subr.mxu0 %v3664_v1 }
 0xb06   :  { %3311 = vmatmul.mubr.msk.f32.vlgmr.msra.gmra.mxu1 %vm76_vm3, %v1372_v0  ;;  %3316 = vmatmul.mubr.msk.f32.vlgmr.msra.gmra.mxu0 %vm150_vm2, %v2975_v7 }
 0xb07   :  { %3319 = vmatpush3.msra.mxu0 %v3786_v25  ;;  %3329 = vmatprep.subr.mxu1 %v3664_v1 }
 0xb08   :  { %3320 = vmatprep.subr.mxu0 %v3664_v1  ;;  %3330 = vmatpush3.msra.mxu1 %v3794_v27 }
 0xb09   :  { %3321 = vmatpush3.msra.mxu0 %v3788_v26  ;;  %3331 = vmatprep.subr.mxu1 %v3664_v1 }
 0xb0a   :  { %3322 = vmatprep.subr.mxu0 %v3664_v1  ;;  %3326 = vmatprep.mubr.msk.f32.mxu0 %vm3665_vm0, %v3664_v1 }
 0xb0b   :  { %3323 = vmatpush3.msra.mxu0 %v3802_v29  ;;  %3332 = vmatpush3.msra.mxu1 %v3799_v28 }
 0xb0c   :  { %3324 = vmatprep.subr.mxu0 %v3664_v1  ;;  %3333 = vmatprep.subr.mxu1 %v3664_v1 }
 0xb0d   :  { %3325 = vmatpush3.msra.mxu0 %v3813_v31  ;;  %3334 = vmatpush3.msra.mxu1 %v3810_v30 }
 0xb0e   :  { %3340 = vmatprep.subr.mxu0 %v3664_v1  ;;  %3335 = vmatprep.subr.mxu1 %v3664_v1 }
 0xb0f   :  { %3336 = vmatpush3.msra.mxu1 %v3823_v32  ;;  %3337 = vmatprep.mubr.msk.f32.mxu1 %vm3665_vm0, %v3664_v1 }
 0xb10   :  { %3351 = vmatprep.subr.mxu1 %v3664_v1 }
 0xbbe   :  { %v1366_v8 = vpop.f32.mrf.mxu1 }
 0xbc0   :  { %v3290_v9 = vpop.f32.mrf.mxu1 }
 0xbc2   :  { %v1441_v11 = vpop.f32.mrf.mxu0 }
 0xbc3   :  { %v1442_v12 = vadd.f32 %v1441_v11, %v1366_v8 }
 0xbc4   :  { %v3301_v13 = vpop.f32.mrf.mxu0 }
 0xbc5   :  { %v1445_v14 = vadd.f32 %v3877_v40, %v1442_v12 }
 0xbc6   :  { %v1538_v15 = vpop.f32.mrf.mxu1  ;;  %v1611_v16 = vpop.f32.mrf.mxu0 }
 0xbc7   :  { %3529 = vtanh.f32 %v1445_v14  ;;  %v1612_v17 = vadd.f32 %v1611_v16, %v1538_v15  ;;  %v2974_v23 = vmul.f32 -1.442695, %v1445_v14 }
 0xbc8   :  { %v3312_v18 = vpop.f32.mrf.mxu1  ;;  %v3317_v19 = vpop.f32.mrf.mxu0 }
 0xbc9   :  { %v1615_v20 = vadd.f32 %v3778_v10, %v1612_v17 }
 0xbcb   :  { %3531 = vtanh.f32 %v1615_v20  ;;  %v2979_v24 = vmul.f32 -1.442695, %v1615_v20 }
 0xbcc   :  { %3533 = vpow2.f32 %v2974_v23 }
 0xbcd   :  { %3535 = vpow2.f32 %v2979_v24 }
 0xbd4   :  { %v3530_v21 = vpop.eup %3529 }
 0xbd5   :  { %1455 = vrot.lane.b32.xlu0 %v3530_v21, %s3666_s11 }
 0xbd8   :  { %v3532_v22 = vpop.eup %3531 }
 0xbd9   :  { %1625 = vrot.lane.b32.xlu1 %v3532_v22, %s3666_s11  ;;  %v3534_v33 = vpop.eup %3533 }
 0xbda   :  { %v1449_v34 = vadd.f32 1.0, %v3534_v33  ;;  %v3536_v35 = vpop.eup %3535 }
 0xbdb   :  { %v1619_v36 = vadd.f32 1.0, %v3536_v35 }
 0xbdc   :  { %3537 = vrcp.f32 %v1449_v34 }
 0xbdd   :  { %3539 = vrcp.f32 %v1619_v36 }
 0xbe9   :  { %v3538_v37 = vpop.eup %3537 }
 0xbea   :  { %v3540_v41 = vpop.eup %3539  ;;  %v1453_v44 = vmul.f32 %v3538_v37, %v4005_v53 }
 0xbeb   :  { %v1623_v47 = vmul.f32 %v3540_v41, %v4009_v56 }
 0xc47   :  { %v1456_v38 = vpop.permute.xlu0 %1455 }
 0xc48   :  { %v1458_v39 = vmul.f32 %v3538_v37, %v1456_v38 }
 0xc4a   :  { %1460 = vrot.lane.b32.xlu0 %v1458_v39, %s3667_s12 }
 0xc4b   :  { %v1626_v42 = vpop.permute.xlu1 %1625 }
 0xc4c   :  { %v1628_v43 = vmul.f32 %v3540_v41, %v1626_v42 }
 0xc4e   :  { %1630 = vrot.lane.b32.xlu1 %v1628_v43, %s3667_s12 }
 0xcbc   :  { %v1461_v45 = vpop.permute.xlu0 %1460 }
 0xcbd   :  { %v4065_v46 = vadd.f32 %v1461_v45, %v1453_v44  ;;  %v4140_v44 = vld [vmem:[%s4311_s2 + $0x18] sm:$0xff]  ;;  %v4149_v45 = vld [vmem:[%s4311_s2 + $0x10] sm:$0xff] }
 0xcbf   :  { %3541 = vtanh.f32 %v4065_v46 }
 0xcc0   :  { %v1631_v48 = vpop.permute.xlu1 %1630 }
 0xcc1   :  { %v4069_v49 = vadd.f32 %v1631_v48, %v1623_v47  ;;  %v4157_v47 = vld [vmem:[%s4311_s2 + $0x8] sm:$0xff]  ;;  %v4160_v48 = vld [vmem:[#allocation3] sm:$0x3f] }
 0xcc3   :  { %3543 = vtanh.f32 %v4069_v49 }
 0xccc   :  { %v3542_v50 = vpop.eup %3541 }
 0xccd   :  { %1466 = vrot.lane.b32.xlu0 %v3542_v50, %s3666_s11  ;;  %v4173_v50 = vld [vmem:[%s4311_s2] sm:$0xff] }
 0xcd0   :  { %v3544_v51 = vpop.eup %3543 }
 0xcd1   :  { %1636 = vrot.lane.b32.xlu1 %v3544_v51, %s3666_s11 }
 0xd3f   :  { %v1467_v52 = vpop.permute.xlu0 %1466 }
 0xd40   :  { %v1469_v53 = vmul.f32 %v3538_v37, %v1467_v52 }
 0xd42   :  { %1641 = vrot.lane.b32.xlu0 %v1469_v53, %s3667_s12 }
 0xd43   :  { %v1637_v54 = vpop.permute.xlu1 %1636 }
 0xd44   :  { %v1639_v55 = vmul.f32 %v3540_v41, %v1637_v54 }
 0xd46   :  { %1716 = vrot.lane.b32.xlu1 %v1639_v55, %s3667_s12 }
 0xdb4   :  { %v1642_v56 = vpop.permute.xlu0 %1641 }
 0xdb5   :  { %3327 = vmatmul.mubr.msk.f32.vlgmr.msra.gmra.mxu0 %vm76_vm3, %v1642_v56 }
 0xdb6   :  { %3341 = vmatpush3.msra.mxu0 %v3736_v2  ;;  %3348 = vmatprep.mubr.msk.f32.mxu0 %vm3665_vm0, %v3664_v1  ;;  %v2983_v2 = vld [vmem:[%s4309_s0 + $0xa] sm:$0x3] }
 0xdb7   :  { %3342 = vmatprep.subr.mxu0 %v3664_v1 }
 0xdb8   :  { %3343 = vmatpush3.msra.mxu0 %v3741_v3  ;;  %v1717_v57 = vpop.permute.xlu1 %1716 }
 0xdb9   :  { %3344 = vmatprep.subr.mxu0 %v3664_v1  ;;  %3338 = vmatmul.mubr.msk.f32.vlgmr.msra.gmra.mxu1 %vm76_vm3, %v1717_v57 }
 0xdba   :  { %3345 = vmatpush3.msra.mxu0 %v3748_v4  ;;  %3352 = vmatpush3.msk.msra.mxu1 %vm154_vm1, %v3759_v6 }
 0xdbb   :  { %3346 = vmatprep.subr.mxu0 %v3664_v1  ;;  %3353 = vmatprep.mubr.msk.f32.mxu1 %vm3665_vm0, %v3664_v1 }
 0xdbc   :  { %3347 = vmatpush3.msra.mxu0 %v3755_v5  ;;  %3356 = vmatprep.subr.mxu1 %v3664_v1 }
 0xdbd   :  { %3349 = vmatmul.mubr.msk.f32.vlgmr.msra.gmra.mxu0 %vm76_vm3, %v1717_v57  ;;  %3354 = vmatmul.mubr.msk.f32.vlgmr.msra.gmra.mxu1 %vm150_vm2, %v2983_v2 }
 0xdbe   :  { %3357 = vmatpush3.msra.mxu1 %v3786_v25  ;;  %3367 = vmatprep.subr.mxu0 %v3664_v1 }
 0xdbf   :  { %3358 = vmatprep.subr.mxu1 %v3664_v1  ;;  %3368 = vmatpush3.msra.mxu0 %v3794_v27 }
 0xdc0   :  { %3359 = vmatpush3.msra.mxu1 %v3788_v26  ;;  %3369 = vmatprep.subr.mxu0 %v3664_v1 }
 0xdc1   :  { %3360 = vmatprep.subr.mxu1 %v3664_v1  ;;  %3364 = vmatprep.mubr.msk.f32.mxu1 %vm3665_vm0, %v3664_v1 }
 0xdc2   :  { %3361 = vmatpush3.msra.mxu1 %v3802_v29  ;;  %3370 = vmatpush3.msra.mxu0 %v3799_v28 }
 0xdc3   :  { %3362 = vmatprep.subr.mxu1 %v3664_v1  ;;  %3371 = vmatprep.subr.mxu0 %v3664_v1 }
 0xdc4   :  { %3363 = vmatpush3.msra.mxu1 %v3813_v31  ;;  %3372 = vmatpush3.msra.mxu0 %v3810_v30 }
 0xdc5   :  { %3378 = vmatprep.subr.mxu1 %v3664_v1  ;;  %3373 = vmatprep.subr.mxu0 %v3664_v1 }
 0xdc6   :  { %3374 = vmatpush3.msra.mxu0 %v3823_v32  ;;  %3375 = vmatprep.mubr.msk.f32.mxu0 %vm3665_vm0, %v3664_v1 }
 0xdc7   :  { %3389 = vmatprep.subr.mxu0 %v3664_v1 }
 0xe75   :  { %v1711_v3 = vpop.f32.mrf.mxu0 }
 0xe77   :  { %v3328_v4 = vpop.f32.mrf.mxu0 }
 0xe79   :  { %v1786_v5 = vpop.f32.mrf.mxu1 }
 0xe7a   :  { %v1787_v6 = vadd.f32 %v1786_v5, %v1711_v3 }
 0xe7b   :  { %v3339_v58 = vpop.f32.mrf.mxu1 }
 0xe7c   :  { %v1790_v59 = vadd.f32 %v3877_v40, %v1787_v6 }
 0xe7d   :  { %v1883_v60 = vpop.f32.mrf.mxu0  ;;  %v1956_v61 = vpop.f32.mrf.mxu1 }
 0xe7e   :  { %3545 = vtanh.f32 %v1790_v59  ;;  %v1957_v62 = vadd.f32 %v1956_v61, %v1883_v60  ;;  %v2982_v11 = vmul.f32 -1.442695, %v1790_v59 }
 0xe7f   :  { %v3350_v63 = vpop.f32.mrf.mxu0  ;;  %v3355_v0 = vpop.f32.mrf.mxu1 }
 0xe80   :  { %v1960_v7 = vadd.f32 %v3778_v10, %v1957_v62 }
 0xe82   :  { %3547 = vtanh.f32 %v1960_v7  ;;  %v2987_v12 = vmul.f32 -1.442695, %v1960_v7 }
 0xe83   :  { %3549 = vpow2.f32 %v2982_v11 }
 0xe84   :  { %3551 = vpow2.f32 %v2987_v12 }
 0xe8b   :  { %v3546_v8 = vpop.eup %3545 }
 0xe8c   :  { %1800 = vrot.lane.b32.xlu0 %v3546_v8, %s3666_s11 }
 0xe8f   :  { %v3548_v9 = vpop.eup %3547 }
 0xe90   :  { %1970 = vrot.lane.b32.xlu1 %v3548_v9, %s3666_s11  ;;  %v3550_v13 = vpop.eup %3549 }
 0xe91   :  { %v1794_v14 = vadd.f32 1.0, %v3550_v13  ;;  %v3552_v15 = vpop.eup %3551 }
 0xe92   :  { %v1964_v16 = vadd.f32 1.0, %v3552_v15 }
 0xe93   :  { %3553 = vrcp.f32 %v1794_v14 }
 0xe94   :  { %3555 = vrcp.f32 %v1964_v16 }
 0xea0   :  { %v3554_v17 = vpop.eup %3553 }
 0xea1   :  { %v3556_v19 = vpop.eup %3555  ;;  %v1798_v22 = vmul.f32 %v3554_v17, %v4065_v46 }
 0xea2   :  { %v1968_v33 = vmul.f32 %v3556_v19, %v4069_v49  ;;  %v2991_v49 = vld [vmem:[%s4309_s0 + $0xc] sm:$0x3] }
 0xefe   :  { %v1801_v18 = vpop.permute.xlu0 %1800 }
 0xeff   :  { %v1803_v10 = vmul.f32 %v3554_v17, %v1801_v18 }
 0xf01   :  { %1805 = vrot.lane.b32.xlu0 %v1803_v10, %s3667_s12 }
 0xf02   :  { %v1971_v20 = vpop.permute.xlu1 %1970 }
 0xf03   :  { %v1973_v21 = vmul.f32 %v3556_v19, %v1971_v20  ;;  %v2999_v20 = vld [vmem:[%s4309_s0 + $0xe] sm:$0x3] }
 0xf05   :  { %1975 = vrot.lane.b32.xlu1 %v1973_v21, %s3667_s12  ;;  %v3607_v21 = vld [vmem:[#allocation5 + $0x18] sm:$0xff] }
 0xf73   :  { %v1806_v23 = vpop.permute.xlu0 %1805 }
 0xf74   :  { %v4125_v24 = vadd.f32 %v1806_v23, %v1798_v22  ;;  %v3608_v22 = vld [vmem:[%s4313_s4 + $0x18] sm:$0xff] }
 0xf75   :  { %v3609_v23 = vld [vmem:[#allocation5 + $0x10] sm:$0xff] }
 0xf76   :  { %3557 = vtanh.f32 %v4125_v24 }
 0xf77   :  { %v1976_v34 = vpop.permute.xlu1 %1975 }
 0xf78   :  { %v4129_v35 = vadd.f32 %v1976_v34, %v1968_v33  ;;  %v3611_v33 = vld [vmem:[%s4313_s4 + $0x10] sm:$0xff] }
 0xf79   :  { %v3612_v34 = vld [vmem:[#allocation5] sm:$0xff] }
 0xf7a   :  { %3559 = vtanh.f32 %v4129_v35 }
 0xf83   :  { %v3558_v36 = vpop.eup %3557 }
 0xf84   :  { %1811 = vrot.lane.b32.xlu0 %v3558_v36, %s3666_s11  ;;  %v3614_v36 = vld [vmem:[%s4313_s4] sm:$0xff] }
 0xf87   :  { %v3560_v37 = vpop.eup %3559 }
 0xf88   :  { %1981 = vrot.lane.b32.xlu1 %v3560_v37, %s3666_s11 }
 0xff6   :  { %v1812_v38 = vpop.permute.xlu0 %1811 }
 0xff7   :  { %v1814_v39 = vmul.f32 %v3554_v17, %v1812_v38 }
 0xff9   :  { %1986 = vrot.lane.b32.xlu0 %v1814_v39, %s3667_s12 }
 0xffa   :  { %v1982_v41 = vpop.permute.xlu1 %1981 }
 0xffb   :  { %v1984_v42 = vmul.f32 %v3556_v19, %v1982_v41 }
 0xffd   :  { %2061 = vrot.lane.b32.xlu1 %v1984_v42, %s3667_s12 }
0x106b   :  { %v1987_v43 = vpop.permute.xlu0 %1986 }
0x106c   :  { %3365 = vmatmul.mubr.msk.f32.vlgmr.msra.gmra.mxu1 %vm76_vm3, %v1987_v43  ;;  %v3615_v43 = vld [vmem:[%s4315_s6] ss:$0 sm:$0xff] }
0x106d   :  { %3379 = vmatpush3.msra.mxu1 %v4140_v44  ;;  %3386 = vmatprep.mubr.msk.f32.mxu1 %vm3665_vm0, %v3664_v1 }
0x106e   :  { %3380 = vmatprep.subr.mxu1 %v3664_v1 }
0x106f   :  { %3381 = vmatpush3.msra.mxu1 %v4149_v45  ;;  %v2062_v46 = vpop.permute.xlu1 %2061 }
0x1070   :  { %3382 = vmatprep.subr.mxu1 %v3664_v1  ;;  %3376 = vmatmul.mubr.msk.f32.vlgmr.msra.gmra.mxu0 %vm76_vm3, %v2062_v46 }
0x1071   :  { %3383 = vmatpush3.msra.mxu1 %v4157_v47  ;;  %3390 = vmatpush3.msk.msra.mxu0 %vm154_vm1, %v4160_v48 }
0x1072   :  { %3384 = vmatprep.subr.mxu1 %v3664_v1  ;;  %3391 = vmatprep.mubr.msk.f32.mxu0 %vm3665_vm0, %v3664_v1 }
0x1073   :  { %3385 = vmatpush3.msra.mxu1 %v4173_v50  ;;  %3394 = vmatprep.subr.mxu0 %v3664_v1 }
0x1074   :  { %3387 = vmatmul.mubr.msk.f32.vlgmr.msra.gmra.mxu1 %vm76_vm3, %v2062_v46  ;;  %3392 = vmatmul.mubr.msk.f32.vlgmr.msra.gmra.mxu0 %vm150_vm2, %v2991_v49 }
0x1075   :  { %3395 = vmatpush3.msra.mxu0 %v3786_v25  ;;  %3405 = vmatprep.subr.mxu1 %v3664_v1 }
0x1076   :  { %3396 = vmatprep.subr.mxu0 %v3664_v1  ;;  %3406 = vmatpush3.msra.mxu1 %v3794_v27 }
0x1077   :  { %3397 = vmatpush3.msra.mxu0 %v3788_v26  ;;  %3407 = vmatprep.subr.mxu1 %v3664_v1 }
0x1078   :  { %3398 = vmatprep.subr.mxu0 %v3664_v1  ;;  %3402 = vmatprep.mubr.msk.f32.mxu0 %vm3665_vm0, %v3664_v1 }
0x1079   :  { %3399 = vmatpush3.msra.mxu0 %v3802_v29  ;;  %3408 = vmatpush3.msra.mxu1 %v3799_v28 }
0x107a   :  { %3400 = vmatprep.subr.mxu0 %v3664_v1  ;;  %3409 = vmatprep.subr.mxu1 %v3664_v1 }
0x107b   :  { %3401 = vmatpush3.msra.mxu0 %v3813_v31  ;;  %3410 = vmatpush3.msra.mxu1 %v3810_v30 }
0x107c   :  { %3416 = vmatprep.subr.mxu0 %v3664_v1  ;;  %3411 = vmatprep.subr.mxu1 %v3664_v1 }
0x107d   :  { %3412 = vmatpush3.msra.mxu1 %v3823_v32  ;;  %3413 = vmatprep.mubr.msk.f32.mxu1 %vm3665_vm0, %v3664_v1  ;;  %v4204_v32 = vld [vmem:[%s4312_s3] ss:$0 sm:$0xff] }
0x107e   :  { %3427 = vmatprep.subr.mxu1 %v3664_v1 }
0x112c   :  { %v2056_v25 = vpop.f32.mrf.mxu1 }
0x112e   :  { %v3366_v26 = vpop.f32.mrf.mxu1 }
0x1130   :  { %v2131_v27 = vpop.f32.mrf.mxu0 }
0x1131   :  { %v2132_v28 = vadd.f32 %v2131_v27, %v2056_v25 }
0x1132   :  { %v3377_v29 = vpop.f32.mrf.mxu0 }
0x1133   :  { %v2135_v31 = vadd.f32 %v3877_v40, %v2132_v28 }
0x1134   :  { %v2228_v51 = vpop.f32.mrf.mxu1  ;;  %v2301_v30 = vpop.f32.mrf.mxu0 }
0x1135   :  { %3561 = vtanh.f32 %v2135_v31  ;;  %v2302_v52 = vadd.f32 %v2301_v30, %v2228_v51  ;;  %v2990_v40 = vmul.f32 -1.442695, %v2135_v31 }
0x1136   :  { %v3388_v53 = vpop.f32.mrf.mxu1  ;;  %v3393_v54 = vpop.f32.mrf.mxu0 }
0x1137   :  { %v2305_v55 = vadd.f32 %v4204_v32, %v2302_v52 }
0x1139   :  { %3563 = vtanh.f32 %v2305_v55  ;;  %v2995_v2 = vmul.f32 -1.442695, %v2305_v55 }
0x113a   :  { %3565 = vpow2.f32 %v2990_v40 }
0x113b   :  { %3567 = vpow2.f32 %v2995_v2 }
0x1142   :  { %v3562_v56 = vpop.eup %3561 }
0x1143   :  { %2145 = vrot.lane.b32.xlu0 %v3562_v56, %s3666_s11 }
0x1146   :  { %v3564_v57 = vpop.eup %3563 }
0x1147   :  { %2315 = vrot.lane.b32.xlu1 %v3564_v57, %s3666_s11  ;;  %v3566_v3 = vpop.eup %3565 }
0x1148   :  { %v2139_v4 = vadd.f32 1.0, %v3566_v3  ;;  %v3568_v5 = vpop.eup %3567 }
0x1149   :  { %v2309_v6 = vadd.f32 1.0, %v3568_v5 }
0x114a   :  { %3569 = vrcp.f32 %v2139_v4 }
0x114b   :  { %3571 = vrcp.f32 %v2309_v6 }
0x1157   :  { %v3570_v58 = vpop.eup %3569 }
0x1158   :  { %v3572_v61 = vpop.eup %3571  ;;  %v2143_v0 = vmul.f32 %v3570_v58, %v4125_v24  ;;  %v3610_v24 = vld [vmem:[#allocation5 + $0x8] sm:$0xff] }
0x1159   :  { %v2313_v9 = vmul.f32 %v3572_v61, %v4129_v35  ;;  %v3613_v35 = vld [vmem:[%s4313_s4 + $0x8] sm:$0xff] }
0x11b5   :  { %v2146_v59 = vpop.permute.xlu0 %2145 }
0x11b6   :  { %v2148_v60 = vmul.f32 %v3570_v58, %v2146_v59 }
0x11b8   :  { %2150 = vrot.lane.b32.xlu0 %v2148_v60, %s3667_s12 }
0x11b9   :  { %v2316_v62 = vpop.permute.xlu1 %2315 }
0x11ba   :  { %v2318_v63 = vmul.f32 %v3572_v61, %v2316_v62 }
0x11bc   :  { %2320 = vrot.lane.b32.xlu1 %v2318_v63, %s3667_s12 }
0x122a   :  { %v2151_v7 = vpop.permute.xlu0 %2150 }
0x122b   :  { %v4212_v8 = vadd.f32 %v2151_v7, %v2143_v0 }
0x122d   :  { %3573 = vtanh.f32 %v4212_v8 }
0x122e   :  { %v2321_v11 = vpop.permute.xlu1 %2320 }
0x122f   :  { %v4216_v12 = vadd.f32 %v2321_v11, %v2313_v9 }
0x1231   :  { %3575 = vtanh.f32 %v4216_v12 }
0x123a   :  { %v3574_v13 = vpop.eup %3573 }
0x123b   :  { %2156 = vrot.lane.b32.xlu0 %v3574_v13, %s3666_s11 }
0x123e   :  { %v3576_v14 = vpop.eup %3575 }
0x123f   :  { %2326 = vrot.lane.b32.xlu1 %v3576_v14, %s3666_s11 }
0x12ad   :  { %v2157_v15 = vpop.permute.xlu0 %2156 }
0x12ae   :  { %v2159_v16 = vmul.f32 %v3570_v58, %v2157_v15 }
0x12b0   :  { %2331 = vrot.lane.b32.xlu0 %v2159_v16, %s3667_s12 }
0x12b1   :  { %v2327_v17 = vpop.permute.xlu1 %2326 }
0x12b2   :  { %v2329_v18 = vmul.f32 %v3572_v61, %v2327_v17 }
0x12b4   :  { %2406 = vrot.lane.b32.xlu1 %v2329_v18, %s3667_s12 }
0x1322   :  { %v2332_v10 = vpop.permute.xlu0 %2331 }
0x1323   :  { %3403 = vmatmul.mubr.msk.f32.vlgmr.msra.gmra.mxu0 %vm76_vm3, %v2332_v10 }
0x1324   :  { %3417 = vmatpush3.msra.mxu0 %v4140_v44  ;;  %3424 = vmatprep.mubr.msk.f32.mxu0 %vm3665_vm0, %v3664_v1 }
0x1325   :  { %3418 = vmatprep.subr.mxu0 %v3664_v1 }
0x1326   :  { %3419 = vmatpush3.msra.mxu0 %v4149_v45  ;;  %v2407_v19 = vpop.permute.xlu1 %2406 }
0x1327   :  { %3420 = vmatprep.subr.mxu0 %v3664_v1  ;;  %3414 = vmatmul.mubr.msk.f32.vlgmr.msra.gmra.mxu1 %vm76_vm3, %v2407_v19 }
0x1328   :  { %3421 = vmatpush3.msra.mxu0 %v4157_v47  ;;  %3428 = vmatpush3.msk.msra.mxu1 %vm154_vm1, %v4160_v48 }
0x1329   :  { %3422 = vmatprep.subr.mxu0 %v3664_v1  ;;  %3429 = vmatprep.mubr.msk.f32.mxu1 %vm3665_vm0, %v3664_v1 }
0x132a   :  { %3423 = vmatpush3.msra.mxu0 %v4173_v50  ;;  %3432 = vmatprep.subr.mxu1 %v3664_v1 }
0x132b   :  { %3425 = vmatmul.mubr.msk.f32.vlgmr.msra.gmra.mxu0 %vm76_vm3, %v2407_v19  ;;  %3430 = vmatmul.mubr.msk.f32.vlgmr.msra.gmra.mxu1 %vm150_vm2, %v2999_v20 }
0x132c   :  { %3433 = vmatpush3.msra.mxu1 %v3607_v21  ;;  %3443 = vmatprep.subr.mxu0 %v3664_v1 }
0x132d   :  { %3434 = vmatprep.subr.mxu1 %v3664_v1  ;;  %3444 = vmatpush3.msra.mxu0 %v3608_v22 }
0x132e   :  { %3435 = vmatpush3.msra.mxu1 %v3609_v23  ;;  %3445 = vmatprep.subr.mxu0 %v3664_v1  ;;  %v2853_v23 = vld [vmem:[%s4316_s7 + $0x18] sm:$0xff] }
0x132f   :  { %3436 = vmatprep.subr.mxu1 %v3664_v1  ;;  %3440 = vmatprep.mubr.msk.f32.mxu1 %vm3665_vm0, %v3664_v1 }
0x1330   :  { %3437 = vmatpush3.msra.mxu1 %v3610_v24  ;;  %3446 = vmatpush3.msra.mxu0 %v3611_v33  ;;  %v2852_v24 = vld [vmem:[%s4316_s7 + $0x10] sm:$0xff]  ;;  %v2851_v33 = vld [vmem:[%s4316_s7 + $0x8] sm:$0xff] }
0x1331   :  { %3438 = vmatprep.subr.mxu1 %v3664_v1  ;;  %3447 = vmatprep.subr.mxu0 %v3664_v1 }
0x1332   :  { %3439 = vmatpush3.msra.mxu1 %v3612_v34  ;;  %3448 = vmatpush3.msra.mxu0 %v3613_v35  ;;  %v2850_v34 = vld [vmem:[%s4316_s7] sm:$0xff] }
0x1333   :  { %3449 = vmatprep.subr.mxu0 %v3664_v1  ;;  %3451 = vmatprep.mubr.msk.f32.mxu0 %vm3665_vm0, %v3664_v1 }
0x1334   :  { %3450 = vmatpush3.msra.mxu0 %v3614_v36  ;;  %3454 = vmatprep.subr.mxu1 %v3664_v1 }
0x13e3   :  { %v2401_v37 = vpop.f32.mrf.mxu0 }
0x13e5   :  { %v3404_v38 = vpop.f32.mrf.mxu0 }
0x13e7   :  { %v2476_v39 = vpop.f32.mrf.mxu1 }
0x13e8   :  { %v2477_v41 = vadd.f32 %v2476_v39, %v2401_v37  ;;  %v3007_v39 = vld [vmem:[#allocation2] ss:$0 sm:$0xff] }
0x13e9   :  { %v3415_v42 = vpop.f32.mrf.mxu1 }
0x13ea   :  { %v2480_v44 = vadd.f32 %v3615_v43, %v2477_v41 }
0x13eb   :  { %v2573_v45 = vpop.f32.mrf.mxu0  ;;  %v2646_v46 = vpop.f32.mrf.mxu1 }
0x13ec   :  { %3577 = vtanh.f32 %v2480_v44  ;;  %v2647_v47 = vadd.f32 %v2646_v46, %v2573_v45  ;;  %v2998_v27 = vmul.f32 -1.442695, %v2480_v44 }
0x13ed   :  { %v3426_v48 = vpop.f32.mrf.mxu0  ;;  %v3431_v49 = vpop.f32.mrf.mxu1 }
0x13ee   :  { %v2650_v50 = vadd.f32 %v4204_v32, %v2647_v47 }
0x13f0   :  { %3579 = vtanh.f32 %v2650_v50  ;;  %v3003_v28 = vmul.f32 -1.442695, %v2650_v50 }
0x13f1   :  { %3581 = vpow2.f32 %v2998_v27 }
0x13f2   :  { %3583 = vpow2.f32 %v3003_v28 }
0x13f9   :  { %v3578_v25 = vpop.eup %3577 }
0x13fa   :  { %2490 = vrot.lane.b32.xlu0 %v3578_v25, %s3666_s11 }
0x13fd   :  { %v3580_v26 = vpop.eup %3579 }
0x13fe   :  { %2660 = vrot.lane.b32.xlu1 %v3580_v26, %s3666_s11  ;;  %v3582_v29 = vpop.eup %3581 }
0x13ff   :  { %v2484_v31 = vadd.f32 1.0, %v3582_v29  ;;  %v3584_v51 = vpop.eup %3583 }
0x1400   :  { %v2654_v30 = vadd.f32 1.0, %v3584_v51 }
0x1401   :  { %3585 = vrcp.f32 %v2484_v31 }
0x1402   :  { %3587 = vrcp.f32 %v2654_v30 }
0x140e   :  { %v3586_v52 = vpop.eup %3585 }
0x140f   :  { %v3588_v32 = vpop.eup %3587  ;;  %v2488_v57 = vmul.f32 %v3586_v52, %v4212_v8 }
0x1410   :  { %v2658_v3 = vmul.f32 %v3588_v32, %v4216_v12 }
0x146c   :  { %v2491_v53 = vpop.permute.xlu0 %2490 }
0x146d   :  { %v2493_v54 = vmul.f32 %v3586_v52, %v2491_v53 }
0x146f   :  { %2495 = vrot.lane.b32.xlu0 %v2493_v54, %s3667_s12 }
0x1470   :  { %v2661_v55 = vpop.permute.xlu1 %2660 }
0x1471   :  { %v2663_v56 = vmul.f32 %v3588_v32, %v2661_v55 }
0x1473   :  { %2665 = vrot.lane.b32.xlu1 %v2663_v56, %s3667_s12 }
0x14e1   :  { %v2496_v40 = vpop.permute.xlu0 %2495 }
0x14e2   :  { %v2498_v2 = vadd.f32 %v2496_v40, %v2488_v57 }
0x14e4   :  { %3589 = vtanh.f32 %v2498_v2 }
0x14e5   :  { %v2666_v4 = vpop.permute.xlu1 %2665 }
0x14e6   :  { %v2668_v5 = vadd.f32 %v2666_v4, %v2658_v3 }
0x14e8   :  { %3591 = vtanh.f32 %v2668_v5 }
0x14f1   :  { %v3590_v6 = vpop.eup %3589 }
0x14f2   :  { %2501 = vrot.lane.b32.xlu0 %v3590_v6, %s3666_s11 }
0x14f5   :  { %v3592_v58 = vpop.eup %3591 }
0x14f6   :  { %2671 = vrot.lane.b32.xlu1 %v3592_v58, %s3666_s11 }
0x1564   :  { %v2502_v59 = vpop.permute.xlu0 %2501 }
0x1565   :  { %v2504_v60 = vmul.f32 %v3586_v52, %v2502_v59 }
0x1567   :  { %2676 = vrot.lane.b32.xlu0 %v2504_v60, %s3667_s12 }
0x1568   :  { %v2672_v61 = vpop.permute.xlu1 %2671 }
0x1569   :  { %v2674_v62 = vmul.f32 %v3588_v32, %v2672_v61 }
0x156b   :  { %2751 = vrot.lane.b32.xlu1 %v2674_v62, %s3667_s12 }
0x15d9   :  { %v2677_v63 = vpop.permute.xlu0 %2676 }
0x15da   :  { %3441 = vmatmul.mubr.msk.f32.vlgmr.msra.gmra.mxu1 %vm76_vm3, %v2677_v63 }
0x15db   :  { %3462 = vmatprep.mubr.msk.f32.mxu1 %vm3665_vm0, %v3664_v1  ;;  %3455 = vmatpush3.msra.mxu1 %v2853_v23 }
0x15dc   :  { %3456 = vmatprep.subr.mxu1 %v3664_v1 }
0x15dd   :  { %v2752_v0 = vpop.permute.xlu1 %2751  ;;  %3457 = vmatpush3.msra.mxu1 %v2852_v24 }
0x15de   :  { %3452 = vmatmul.mubr.msk.f32.vlgmr.msra.gmra.mxu0 %vm76_vm3, %v2752_v0  ;;  %3458 = vmatprep.subr.mxu1 %v3664_v1 }
0x15df   :  { %3459 = vmatpush3.msra.mxu1 %v2851_v33 }
0x15e0   :  { %3460 = vmatprep.subr.mxu1 %v3664_v1 }
0x15e1   :  { %3461 = vmatpush3.msra.mxu1 %v2850_v34 }
0x169a   :  { %v2746_v7 = vpop.f32.mrf.mxu1 }
0x169c   :  { %v3442_v8 = vpop.f32.mrf.mxu1 }
0x169e   :  { %v2821_v9 = vpop.f32.mrf.mxu0 }
0x169f   :  { %v2822_v11 = vadd.f32 %v2821_v9, %v2746_v7 }
0x16a0   :  { %v3453_v12 = vpop.f32.mrf.mxu0 }
0x16a1   :  { %v2825_v13 = vadd.f32 %v3615_v43, %v2822_v11 }
0x16a3   :  { %3593 = vtanh.f32 %v2825_v13  ;;  %v3006_v15 = vmul.f32 -1.442695, %v2825_v13 }
0x16a5   :  { %3595 = vpow2.f32 %v3006_v15 }
0x16b0   :  { %v3594_v14 = vpop.eup %3593 }
0x16b1   :  { %2835 = vrot.lane.b32.xlu0 %v3594_v14, %s3666_s11 }
0x16b2   :  { %v3596_v16 = vpop.eup %3595 }
0x16b3   :  { %v2829_v17 = vadd.f32 1.0, %v3596_v16 }
0x16b5   :  { %3597 = vrcp.f32 %v2829_v17 }
0x16c2   :  { %v3598_v18 = vpop.eup %3597 }
0x16c3   :  { %v2833_v20 = vmul.f32 %v3598_v18, %v2498_v2 }
0x1723   :  { %v2836_v10 = vpop.permute.xlu0 %2835 }
0x1724   :  { %v2838_v19 = vmul.f32 %v3598_v18, %v2836_v10 }
0x1726   :  { %2840 = vrot.lane.b32.xlu1 %v2838_v19, %s3667_s12 }
0x1798   :  { %v2841_v21 = vpop.permute.xlu1 %2840 }
0x1799   :  { %v2843_v22 = vadd.f32 %v2841_v21, %v2833_v20 }
0x179b   :  { %3599 = vtanh.f32 %v2843_v22 }
0x17a8   :  { %v3600_v35 = vpop.eup %3599 }
0x17a9   :  { %2846 = vrot.lane.b32.xlu0 %v3600_v35, %s3666_s11 }
0x181b   :  { %v2847_v36 = vpop.permute.xlu0 %2846 }
0x181c   :  { %v2849_v37 = vmul.f32 %v3598_v18, %v2847_v36 }
0x181e   :  { %2862 = vrot.lane.b32.xlu1 %v2849_v37, %s3667_s12 }
0x1890   :  { %v2863_v38 = vpop.permute.xlu1 %2862 }
0x1891   :  { %3463 = vmatmul.mubr.msk.f32.vlgmr.msra.gmra.mxu1 %vm76_vm3, %v2863_v38 }
0x1951   :  { %v2932_v41 = vpop.f32.mrf.mxu1 }
0x1952   :  { %v2933_v42 = vadd.f32 %v3007_v39, %v2932_v41 }
0x1953   :  { %v3464_v43 = vpop.f32.mrf.mxu1 }
0x1954   :  { %2937 = vst.msk [vmem:[%s4318_s9] sm:$0x3] %vm2936_vm4, %v2933_v42 }
0x1955   :  { %2942 = vsyncpa [#allocation4], 1 }
0x1956   :  { %2943 = vsyncpa [#allocation6], 1 }

</bundles_post_ra>
